<compile_context>
chip_gen: v5e
topology: v5e:2x2
jax: 0.10.0
libtpu: 0.0.40
codegen_flags: <defaults>
</compile_context>

<pallas_src>
import jax
import jax.numpy as jnp
from jax.experimental import pallas as pl
from jax.experimental.pallas import tpu as pltpu

# Model dims (from the nn.Module __init__)
D_IN, D_H1, D_H2, D_H3, D_OUT = 768, 512, 256, 128, 1


def _round_up(n, m):
    return ((n + m - 1) // m) * m


def mlp_kernel(x_ref, w1_ref, b1_ref, w2_ref, b2_ref,
               w3_ref, b3_ref, w4_ref, b4_ref, o_ref):
    # x tile arrives f32; cast to bf16 (VPU) so the MXU runs at bf16 rate.
    x = x_ref[...].astype(jnp.bfloat16)

    h1 = jnp.dot(x, w1_ref[...], preferred_element_type=jnp.float32) + b1_ref[...]
    h1 = jnp.maximum(h1, 0.0)

    h2 = jnp.dot(h1.astype(jnp.bfloat16), w2_ref[...],
                 preferred_element_type=jnp.float32) + b2_ref[...]
    h2 = jnp.maximum(h2, 0.0)

    h3 = jnp.dot(h2.astype(jnp.bfloat16), w3_ref[...],
                 preferred_element_type=jnp.float32) + b3_ref[...]
    h3 = jnp.maximum(h3, 0.0)

    # Final 128 -> 1 layer: contract the feature axis of the (1, 128) w4 row
    # against the feature axis of h3 (q @ k^T pattern).  Result is already a
    # lane-dense (1, batch_tile) row; f32 throughout (tiny FLOP count).
    out_row = jax.lax.dot_general(
        w4_ref[...], h3,
        dimension_numbers=(((1,), (1,)), ((), ())),
        preferred_element_type=jnp.float32) + b4_ref[...]
    o_ref[...] = out_row.astype(o_ref.dtype)


def function_classifier(x, params, *, batch_tile=None):
    """x: (B, 768) float32.  params: w1..w4 stored (in,out), b1..b4 stored (1,out)."""
    B, d_in = x.shape
    assert d_in == D_IN

    if batch_tile is None:
        # ~8 MB per grid step total residency (x tile f32 x 2 buffers + bf16
        # weights x 2 + f32 activation temporaries): safe under v5e's 16 MiB
        # scoped-VMEM default and v7x's 64 MiB physical VMEM, while keeping
        # DMAs large enough to hide per-step overhead (~0.35 us).
        batch_tile = 512

    if B <= batch_tile:
        # Single-tile path: every block equals the full (padded) array dims.
        batch_tile = _round_up(max(B, 1), 8)
    else:
        # Multi-tile path: x blocks need a multiple-of-8 sublane count and the
        # lane-dense (1, batch_tile) output blocks need a multiple of 128.
        batch_tile = _round_up(batch_tile, 128)
    assert batch_tile % 8 == 0  # fp32/bf16 sublane rule

    B_pad = _round_up(B, batch_tile)
    if B_pad != B:
        x = jnp.pad(x, ((0, B_pad - B), (0, 0)))
    num_tiles = B_pad // batch_tile

    # Pre-cast the big weights to bf16 once (halves resident VMEM + HBM bytes).
    w1 = params["w1"].astype(jnp.bfloat16)
    w2 = params["w2"].astype(jnp.bfloat16)
    w3 = params["w3"].astype(jnp.bfloat16)
    w4 = params["w4"].reshape(1, D_H3).astype(jnp.float32)   # (1, 128) row
    b1 = params["b1"].astype(jnp.float32)
    b2 = params["b2"].astype(jnp.float32)
    b3 = params["b3"].astype(jnp.float32)
    b4 = params["b4"].reshape(1, 1).astype(jnp.float32)

    full = lambda shape: pl.BlockSpec(shape, lambda i: (0, 0))

    out = pl.pallas_call(
        mlp_kernel,
        out_shape=jax.ShapeDtypeStruct((1, B_pad), x.dtype),
        grid_spec=pltpu.PrefetchScalarGridSpec(
            num_scalar_prefetch=0,
            grid=(num_tiles,),
            in_specs=[
                pl.BlockSpec((batch_tile, D_IN), lambda i: (i, 0)),
                full((D_IN, D_H1)), full((1, D_H1)),
                full((D_H1, D_H2)), full((1, D_H2)),
                full((D_H2, D_H3)), full((1, D_H3)),
                full((1, D_H3)),                      # w4 as a (1, 128) row
                full((1, 1)),                         # b4 scalar
            ],
            # Lane-dense output: each grid step writes one (1, batch_tile)
            # segment of a single (1, B_pad) row -> unmasked vector stores.
            out_specs=pl.BlockSpec((1, batch_tile), lambda i: (0, i)),
        ),
        compiler_params=pltpu.CompilerParams(
            dimension_semantics=("parallel",)),
    )(x, w1, b1, w2, b2, w3, b3, w4, b4)

    # (1, B_pad) -> (B, 1), dropping batch padding.
    return out.reshape(B_pad, 1)[:B]


def init_params(key):
    """Deterministic synthetic init (same shapes/init scheme as the PyTorch module)."""
    dims = [(D_IN, D_H1), (D_H1, D_H2), (D_H2, D_H3), (D_H3, D_OUT)]
    params = {}
    keys = jax.random.split(key, 2 * len(dims))
    for idx, (din, dout) in enumerate(dims):
        kw, kb = keys[2 * idx], keys[2 * idx + 1]
        bound = 1.0 / jnp.sqrt(din)
        # stored as (in, out) == transpose of PyTorch's (out, in) weight
        params[f"w{idx + 1}"] = jax.random.uniform(
            kw, (din, dout), jnp.float32, -bound, bound)
        params[f"b{idx + 1}"] = jax.random.uniform(
            kb, (1, dout), jnp.float32, -bound, bound)
    return params


def reference_forward(x, params):
    """Pure-JAX reference mirroring the kernel's precision policy:
    bf16 MXU operands, f32 accumulation, f32 bias/ReLU, f32 final layer."""
    h = x
    for i in (1, 2, 3):
        w = params[f"w{i}"].astype(jnp.bfloat16)
        h = jnp.dot(h.astype(jnp.bfloat16), w, preferred_element_type=jnp.float32)
        h = jnp.maximum(h + params[f"b{i}"], 0.0)
    return jnp.dot(h, params["w4"]) + params["b4"]


if __name__ == "__main__":
    key = jax.random.PRNGKey(0)
    k_x1, k_x2, k_p = jax.random.split(key, 3)
    params = init_params(k_p)

    # Small single-tile case (B=8): blocks equal full array dims.
    B = 8
    x = jax.random.normal(k_x1, (B, D_IN), jnp.float32)
    out = jax.block_until_ready(function_classifier(x, params))
    ref = reference_forward(x, params)
    assert out.shape == (B, D_OUT)
    assert jnp.allclose(out, ref, atol=2e-2, rtol=2e-2), "mismatch vs reference (B=8)"

    # Multi-tile + padded case: exercises grid pipelining, batch padding and
    # the lane-dense multi-block output path.
    B2 = 200
    x2 = jax.random.normal(k_x2, (B2, D_IN), jnp.float32)
    out2 = jax.block_until_ready(function_classifier(x2, params, batch_tile=128))
    ref2 = reference_forward(x2, params)
    assert out2.shape == (B2, D_OUT)
    assert jnp.allclose(out2, ref2, atol=2e-2, rtol=2e-2), "mismatch vs reference (B=200)"

    print("KERNEL_OK")
</pallas_src>

<mosaic_0001>
module attributes {stable_mosaic.version = 11 : i64} {
  func.func @mlp_kernel(%arg0: i32, %arg1: memref<8x768xf32, #tpu.memory_space<vmem>>, %arg2: memref<768x512xbf16, #tpu.memory_space<vmem>>, %arg3: memref<1x512xf32, #tpu.memory_space<vmem>>, %arg4: memref<512x256xbf16, #tpu.memory_space<vmem>>, %arg5: memref<1x256xf32, #tpu.memory_space<vmem>>, %arg6: memref<256x128xbf16, #tpu.memory_space<vmem>>, %arg7: memref<1x128xf32, #tpu.memory_space<vmem>>, %arg8: memref<1x128xf32, #tpu.memory_space<vmem>>, %arg9: memref<1x1xf32, #tpu.memory_space<vmem>>, %arg10: memref<1x8xf32, #tpu.memory_space<vmem>>) attributes {dimension_semantics = [#tpu.dimension_semantics<parallel>], iteration_bounds = array<i64: 1>, scalar_prefetch = 0 : i64, scratch_operands = 0 : i64, tpu.core_type = #tpu.core_type<tc>, window_params = [{transform_indices = @transform_0, window_bounds = array<i64: 8, 768>}, {pipeline_mode = #tpu.pipeline_mode<synchronous>, transform_indices = @transform_1, window_bounds = array<i64: 768, 512>}, {pipeline_mode = #tpu.pipeline_mode<synchronous>, transform_indices = @transform_2, window_bounds = array<i64: 1, 512>}, {pipeline_mode = #tpu.pipeline_mode<synchronous>, transform_indices = @transform_3, window_bounds = array<i64: 512, 256>}, {pipeline_mode = #tpu.pipeline_mode<synchronous>, transform_indices = @transform_4, window_bounds = array<i64: 1, 256>}, {pipeline_mode = #tpu.pipeline_mode<synchronous>, transform_indices = @transform_5, window_bounds = array<i64: 256, 128>}, {pipeline_mode = #tpu.pipeline_mode<synchronous>, transform_indices = @transform_6, window_bounds = array<i64: 1, 128>}, {pipeline_mode = #tpu.pipeline_mode<synchronous>, transform_indices = @transform_7, window_bounds = array<i64: 1, 128>}, {pipeline_mode = #tpu.pipeline_mode<synchronous>, transform_indices = @transform_8, window_bounds = array<i64: 1, 1>}, {transform_indices = @transform_9, window_bounds = array<i64: 1, 8>}]} {
    %c0 = arith.constant 0 : index
    %c0_0 = arith.constant 0 : index
    %0 = vector.load %arg1[%c0, %c0_0] : memref<8x768xf32, #tpu.memory_space<vmem>>, vector<8x768xf32>
    %1 = arith.truncf %0 : vector<8x768xf32> to vector<8x768xbf16>
    %c0_1 = arith.constant 0 : index
    %c0_2 = arith.constant 0 : index
    %2 = vector.load %arg2[%c0_1, %c0_2] : memref<768x512xbf16, #tpu.memory_space<vmem>>, vector<768x512xbf16>
    %cst = arith.constant dense<0.000000e+00> : vector<8x512xf32>
    %3 = tpu.matmul %1, %2, %cst {dimension_numbers = #tpu.dot_dimension_numbers<[1], [0], [0], [1], [0, 0, 1, 1], [], []>} : vector<8x768xbf16>, vector<768x512xbf16>, vector<8x512xf32> -> vector<8x512xf32>
    %c0_3 = arith.constant 0 : index
    %c0_4 = arith.constant 0 : index
    %4 = vector.load %arg3[%c0_3, %c0_4] : memref<1x512xf32, #tpu.memory_space<vmem>>, vector<1x512xf32>
    %5 = vector.broadcast %4 : vector<1x512xf32> to vector<8x512xf32>
    %6 = arith.addf %3, %5 : vector<8x512xf32>
    %cst_5 = arith.constant 0.000000e+00 : f32
    %7 = vector.broadcast %cst_5 : f32 to vector<8x512xf32>
    %8 = arith.maximumf %6, %7 : vector<8x512xf32>
    %9 = arith.truncf %8 : vector<8x512xf32> to vector<8x512xbf16>
    %c0_6 = arith.constant 0 : index
    %c0_7 = arith.constant 0 : index
    %10 = vector.load %arg4[%c0_6, %c0_7] : memref<512x256xbf16, #tpu.memory_space<vmem>>, vector<512x256xbf16>
    %cst_8 = arith.constant dense<0.000000e+00> : vector<8x256xf32>
    %11 = tpu.matmul %9, %10, %cst_8 {dimension_numbers = #tpu.dot_dimension_numbers<[1], [0], [0], [1], [0, 0, 1, 1], [], []>} : vector<8x512xbf16>, vector<512x256xbf16>, vector<8x256xf32> -> vector<8x256xf32>
    %c0_9 = arith.constant 0 : index
    %c0_10 = arith.constant 0 : index
    %12 = vector.load %arg5[%c0_9, %c0_10] : memref<1x256xf32, #tpu.memory_space<vmem>>, vector<1x256xf32>
    %13 = vector.broadcast %12 : vector<1x256xf32> to vector<8x256xf32>
    %14 = arith.addf %11, %13 : vector<8x256xf32>
    %cst_11 = arith.constant 0.000000e+00 : f32
    %15 = vector.broadcast %cst_11 : f32 to vector<8x256xf32>
    %16 = arith.maximumf %14, %15 : vector<8x256xf32>
    %17 = arith.truncf %16 : vector<8x256xf32> to vector<8x256xbf16>
    %c0_12 = arith.constant 0 : index
    %c0_13 = arith.constant 0 : index
    %18 = vector.load %arg6[%c0_12, %c0_13] : memref<256x128xbf16, #tpu.memory_space<vmem>>, vector<256x128xbf16>
    %cst_14 = arith.constant dense<0.000000e+00> : vector<8x128xf32>
    %19 = tpu.matmul %17, %18, %cst_14 {dimension_numbers = #tpu.dot_dimension_numbers<[1], [0], [0], [1], [0, 0, 1, 1], [], []>} : vector<8x256xbf16>, vector<256x128xbf16>, vector<8x128xf32> -> vector<8x128xf32>
    %c0_15 = arith.constant 0 : index
    %c0_16 = arith.constant 0 : index
    %20 = vector.load %arg7[%c0_15, %c0_16] : memref<1x128xf32, #tpu.memory_space<vmem>>, vector<1x128xf32>
    %21 = vector.broadcast %20 : vector<1x128xf32> to vector<8x128xf32>
    %22 = arith.addf %19, %21 : vector<8x128xf32>
    %cst_17 = arith.constant 0.000000e+00 : f32
    %23 = vector.broadcast %cst_17 : f32 to vector<8x128xf32>
    %24 = arith.maximumf %22, %23 : vector<8x128xf32>
    %c0_18 = arith.constant 0 : index
    %c0_19 = arith.constant 0 : index
    %25 = vector.load %arg8[%c0_18, %c0_19] : memref<1x128xf32, #tpu.memory_space<vmem>>, vector<1x128xf32>
    %cst_20 = arith.constant dense<0.000000e+00> : vector<1x8xf32>
    %26 = tpu.matmul %25, %24, %cst_20 {dimension_numbers = #tpu.dot_dimension_numbers<[1], [1], [0], [0], [0, 0, 1, 0], [], []>} : vector<1x128xf32>, vector<8x128xf32>, vector<1x8xf32> -> vector<1x8xf32>
    %c0_21 = arith.constant 0 : index
    %c0_22 = arith.constant 0 : index
    %27 = vector.load %arg9[%c0_21, %c0_22] : memref<1x1xf32, #tpu.memory_space<vmem>>, vector<1x1xf32>
    %28 = vector.broadcast %27 : vector<1x1xf32> to vector<1x8xf32>
    %29 = arith.addf %26, %28 : vector<1x8xf32>
    %c0_23 = arith.constant 0 : index
    %c0_24 = arith.constant 0 : index
    %30 = vector.load %arg10[%c0_23, %c0_24] : memref<1x8xf32, #tpu.memory_space<vmem>>, vector<1x8xf32>
    tpu.vector_store %arg10[%c0_23, %c0_24], %29 {strides = array<i32>} : memref<1x8xf32, #tpu.memory_space<vmem>>, vector<1x8xf32>,
    return
  }
  func.func @transform_0(%arg0: i32) -> (i32, i32) {
    %c0_i32 = arith.constant 0 : i32
    %c0_i32_0 = arith.constant 0 : i32
    return %arg0, %c0_i32 : i32, i32
  }
  func.func @transform_1(%arg0: i32) -> (i32, i32) {
    %c0_i32 = arith.constant 0 : i32
    %c0_i32_0 = arith.constant 0 : i32
    %c0_i32_1 = arith.constant 0 : i32
    return %c0_i32, %c0_i32_0 : i32, i32
  }
  func.func @transform_2(%arg0: i32) -> (i32, i32) {
    %c0_i32 = arith.constant 0 : i32
    %c0_i32_0 = arith.constant 0 : i32
    %c0_i32_1 = arith.constant 0 : i32
    return %c0_i32, %c0_i32_0 : i32, i32
  }
  func.func @transform_3(%arg0: i32) -> (i32, i32) {
    %c0_i32 = arith.constant 0 : i32
    %c0_i32_0 = arith.constant 0 : i32
    %c0_i32_1 = arith.constant 0 : i32
    return %c0_i32, %c0_i32_0 : i32, i32
  }
  func.func @transform_4(%arg0: i32) -> (i32, i32) {
    %c0_i32 = arith.constant 0 : i32
    %c0_i32_0 = arith.constant 0 : i32
    %c0_i32_1 = arith.constant 0 : i32
    return %c0_i32, %c0_i32_0 : i32, i32
  }
  func.func @transform_5(%arg0: i32) -> (i32, i32) {
    %c0_i32 = arith.constant 0 : i32
    %c0_i32_0 = arith.constant 0 : i32
    %c0_i32_1 = arith.constant 0 : i32
    return %c0_i32, %c0_i32_0 : i32, i32
  }
  func.func @transform_6(%arg0: i32) -> (i32, i32) {
    %c0_i32 = arith.constant 0 : i32
    %c0_i32_0 = arith.constant 0 : i32
    %c0_i32_1 = arith.constant 0 : i32
    return %c0_i32, %c0_i32_0 : i32, i32
  }
  func.func @transform_7(%arg0: i32) -> (i32, i32) {
    %c0_i32 = arith.constant 0 : i32
    %c0_i32_0 = arith.constant 0 : i32
    %c0_i32_1 = arith.constant 0 : i32
    return %c0_i32, %c0_i32_0 : i32, i32
  }
  func.func @transform_8(%arg0: i32) -> (i32, i32) {
    %c0_i32 = arith.constant 0 : i32
    %c0_i32_0 = arith.constant 0 : i32
    %c0_i32_1 = arith.constant 0 : i32
    return %c0_i32, %c0_i32_0 : i32, i32
  }
  func.func @transform_9(%arg0: i32) -> (i32, i32) {
    %c0_i32 = arith.constant 0 : i32
    %c0_i32_0 = arith.constant 0 : i32
    return %c0_i32, %arg0 : i32, i32
  }
}

</mosaic_0001>

<bundles_post_ra>
// kernel: tpu_custom_call.1
= control target key start
LH: loop header
LB: loop body
LE: loop exit
PB: predicated region body
PF: predicated region fallthrough
CT: control target
= control target key end

     0   :  { %s3990_s0 = inlined_call_operand.hbm [shape: f32[8,768], index: 0, kind: input, shape index: {}]   ;;  %s3991_s1 = inlined_call_operand.hbm [shape: bf16[768,512], index: 1, kind: input, shape index: {}]   ;;  %s3992_s2 = inlined_call_operand.hbm [shape: f32[1,512], index: 2, kind: input, shape index: {}]   ;;  %s3993_s3 = inlined_call_operand.hbm [shape: bf16[512,256], index: 3, kind: input, shape index: {}]   ;;  %s3994_s4 = inlined_call_operand.vmem [shape: f32[1,256], index: 4, kind: input, shape index: {}]   ;;  %s3995_s5 = inlined_call_operand.hbm [shape: bf16[256,128], index: 5, kind: input, shape index: {}]   ;;  %s3996_s6 = inlined_call_operand.vmem [shape: f32[1,128], index: 6, kind: input, shape index: {}]   ;;  %s3997_s7 = inlined_call_operand.vmem [shape: f32[1,128], index: 7, kind: input, shape index: {}]   ;;  %s3998_s8 = inlined_call_operand.<no memory space> [shape: f32[1,1], index: 8, kind: input, shape index: {}]   ;;  %s3999_s9 = inlined_call_operand.hbm [shape: f32[1,8], index: 9, kind: output, shape index: {}]  }
   0x1   :  { %v14_v0 = vstv %s3998_s8 }
   0x2   :  { %15 = vst [vmem:[#allocation2] sm:$0x1] %v14_v0 }
   0x3   :  { %16 = vsyncpa [#allocation4], 0 }
   0x4   :  { %17 = vsyncpa [#allocation7], 0 }
   0x5   :  { %18 = vsyncpa [#allocation10], 0  ;;  %s35_s13 = sshll.u32 %s3991_s1, 4  ;;  %s36_s13 = int_to_ptr.hbm [resolvable:$true] %s35_s13 }
   0x6   :  { %19 = vsyncpa [#allocation5], 0  ;;  %s3836_s14 = smov [#allocation6]   ;;  %s59_s18 = sshll.u32 %s3993_s3, 4  ;;  %s60_s18 = int_to_ptr.hbm [resolvable:$true] %s59_s18 }
   0x7   :  { %s37_s15 = sshll.u32 %s3836_s14, 4  ;;  %s3837_s19 = smov 256   ;;  %s38_s15 = int_to_ptr.vmem [resolvable:$true] %s37_s15 }
   0x8   :  { %s3838_s20 = smov 16   ;;  %s3839_s8 = smov [#allocation9]  }
   0x9   :  { %43 = dma.hbm_to_vmem [thread:$0]  %s36_s13, 24576, %s38_s15, [#allocation7], %s3837_s19, %s3837_s19, %s3838_s20  }
   0xa   :  { %s61_s21 = sshll.u32 %s3839_s8, 4  ;;  %s3840_s22 = smov 128   ;;  %s62_s21 = int_to_ptr.vmem [resolvable:$true] %s61_s21 }
   0xb   :  { %s3841_s23 = smov 8   ;;  %s25_s25 = sshll.u32 %s3990_s0, 4  ;;  %s26_s25 = int_to_ptr.hbm [resolvable:$true] %s25_s25 }
   0xc   :  { %67 = dma.hbm_to_vmem [thread:$0]  %s60_s18, 8192, %s62_s21, [#allocation10], %s3840_s22, %s3840_s22, %s3841_s23  }
   0xd   :  { %s3842_s26 = smov [#allocation3]   ;;  %s49_s29 = sshll.u32 %s3992_s2, 4  ;;  %s50_s29 = int_to_ptr.hbm [resolvable:$true] %s49_s29 }
   0xe   :  { %s27_s27 = sshll.u32 %s3842_s26, 4  ;;  %s3843_s30 = smov [#allocation8]   ;;  %s28_s27 = int_to_ptr.vmem [resolvable:$true] %s27_s27 }
   0xf   :  { %30 = dma.hbm_to_vmem [thread:$0]  %s26_s25, 768, %s28_s27, [#allocation4]  }
  0x10   :  { %s51_s10 = sshll.u32 %s3843_s30, 4  ;;  %s74_s13 = sshll.u32 %s3995_s5, 4  ;;  %s52_s10 = int_to_ptr.vmem [resolvable:$true] %s51_s10  ;;  %s75_s13 = int_to_ptr.hbm [resolvable:$true] %s74_s13 }
  0x11   :  { %54 = dma.hbm_to_vmem [thread:$0]  %s50_s29, 64, %s52_s10, [#allocation7]  }
  0x12   :  { %s3844_s0 = smov [#allocation11]   ;;  %s3845_s15 = smov 64  }
  0x13   :  { %s76_s14 = sshll.u32 %s3844_s0, 4  ;;  %s3846_s16 = smov 4   ;;  %s77_s14 = int_to_ptr.vmem [resolvable:$true] %s76_s14 }
  0x14   :  { %82 = dma.hbm_to_vmem [thread:$0]  %s75_s13, 2048, %s77_s14, [#allocation10], %s3845_s15, %s3845_s15, %s3846_s16  }
  0x15   :  { %3828 = dma.done.wait [#allocation4], 768  }
  0x16   :  { %3829 = vsyncadd [#allocation4], 4294966528 }
  0x17   :  { %3830 = dma.done.wait [#allocation7], 24640  }
  0x18   :  { %3831 = vsyncadd [#allocation7], 4294942656 }
  0x19   :  { %3832 = dma.done.wait [#allocation10], 10240  }
  0x1a   :  { %3833 = vsyncadd [#allocation10], 4294957056  ;;  %v2423_v1 = vld [vmem:[#allocation6 + $0xe0] sm:$0xf]  ;;  %v3427_v2 = vld [vmem:[#allocation6 + $0xec] sm:$0xf0] }
  0x1b   :  { %v2551_v3 = vld [vmem:[#allocation6 + $0x1e0] sm:$0xf]  ;;  %v2424_v4 = vor.u32 %v3427_v2, %v2423_v1  ;;  %v3459_v5 = vld [vmem:[#allocation6 + $0x1ec] sm:$0xf0]  ;;  %s3848_s20 = smov [#allocation12]   ;;  %s2297_s23 = sshll.u32 %s3999_s9, 4  ;;  %s2298_s23 = int_to_ptr.hbm [resolvable:$true] %s2297_s23 }
  0x1c   :  { %v2679_v6 = vld [vmem:[#allocation6 + $0x2e0] sm:$0xf]  ;;  %v3491_v7 = vld [vmem:[#allocation6 + $0x2ec] sm:$0xf0]  ;;  %v2552_v8 = vor.u32 %v3459_v5, %v2551_v3  ;;  %s2295_s8 = sshll.u32 %s3848_s20, 4  ;;  %vm2288_vm0 = vcmask 57344   ;;  %s2296_s8 = int_to_ptr.vmem [resolvable:$true] %s2295_s8 }
  0x1d   :  { %v2680_v9 = vor.u32 %v3491_v7, %v2679_v6  ;;  %v2807_v10 = vld [vmem:[#allocation6 + $0x3e0] sm:$0xf]  ;;  %v3523_v11 = vld [vmem:[#allocation6 + $0x3ec] sm:$0xf0]  ;;  %1283 = vmatpush.bf16.msra.mxu0 %v2424_v4 }
  0x1e   :  { %v2407_v12 = vld [vmem:[#allocation6 + $0xc0] sm:$0xf]  ;;  %v2808_v13 = vor.u32 %v3523_v11, %v2807_v10  ;;  %v3423_v14 = vld [vmem:[#allocation6 + $0xcc] sm:$0xf0]  ;;  %1296 = vmatpush.bf16.msra.mxu1 %v2552_v8 }
  0x1f   :  { %v2535_v15 = vld [vmem:[#allocation6 + $0x1c0] sm:$0xf]  ;;  %v3455_v16 = vld [vmem:[#allocation6 + $0x1cc] sm:$0xf0]  ;;  %1309 = vmatpush.bf16.msra.mxu2 %v2680_v9  ;;  %v2408_v17 = vor.u32 %v3423_v14, %v2407_v12 }
  0x20   :  { %v2536_v18 = vor.u32 %v3455_v16, %v2535_v15  ;;  %v2663_v19 = vld [vmem:[#allocation6 + $0x2c0] sm:$0xf]  ;;  %v3487_v20 = vld [vmem:[#allocation6 + $0x2cc] sm:$0xf0]  ;;  %1322 = vmatpush.bf16.msra.mxu3 %v2808_v13 }
  0x21   :  { %v2791_v21 = vld [vmem:[#allocation6 + $0x3c0] sm:$0xf]  ;;  %v2664_v22 = vor.u32 %v3487_v20, %v2663_v19  ;;  %v3519_v23 = vld [vmem:[#allocation6 + $0x3cc] sm:$0xf0]  ;;  %1284 = vmatpush.bf16.msra.mxu0 %v2408_v17 }
  0x22   :  { %v2391_v24 = vld [vmem:[#allocation6 + $0xa0] sm:$0xf]  ;;  %v3419_v25 = vld [vmem:[#allocation6 + $0xac] sm:$0xf0]  ;;  %v2792_v26 = vor.u32 %v3519_v23, %v2791_v21  ;;  %1297 = vmatpush.bf16.msra.mxu1 %v2536_v18 }
  0x23   :  { %v2519_v27 = vld [vmem:[#allocation6 + $0x1a0] sm:$0xf]  ;;  %v3451_v28 = vld [vmem:[#allocation6 + $0x1ac] sm:$0xf0]  ;;  %v2392_v30 = vor.u32 %v3419_v25, %v2391_v24  ;;  %1310 = vmatpush.bf16.msra.mxu2 %v2664_v22 }
  0x24   :  { %v2647_v29 = vld [vmem:[#allocation6 + $0x2a0] sm:$0xf]  ;;  %v3483_v31 = vld [vmem:[#allocation6 + $0x2ac] sm:$0xf0]  ;;  %v2520_v34 = vor.u32 %v3451_v28, %v2519_v27  ;;  %1323 = vmatpush.bf16.msra.mxu3 %v2792_v26 }
  0x25   :  { %v2775_v32 = vld [vmem:[#allocation6 + $0x3a0] sm:$0xf]  ;;  %v3515_v33 = vld [vmem:[#allocation6 + $0x3ac] sm:$0xf0]  ;;  %v2648_v35 = vor.u32 %v3483_v31, %v2647_v29  ;;  %1285 = vmatpush.bf16.msra.mxu0 %v2392_v30 }
  0x26   :  { %v2375_v36 = vld [vmem:[#allocation6 + $0x80] sm:$0xf]  ;;  %v3415_v37 = vld [vmem:[#allocation6 + $0x8c] sm:$0xf0]  ;;  %v2776_v39 = vor.u32 %v3515_v33, %v2775_v32  ;;  %1298 = vmatpush.bf16.msra.mxu1 %v2520_v34  ;;  %v3425_v34 = vld [vmem:[#allocation6 + $0xe4] sm:$0xf] }
  0x27   :  { %v2503_v38 = vld [vmem:[#allocation6 + $0x180] sm:$0xf]  ;;  %v3447_v40 = vld [vmem:[#allocation6 + $0x18c] sm:$0xf0]  ;;  %v2376_v45 = vor.u32 %v3415_v37, %v2375_v36  ;;  %1311 = vmatpush.bf16.msra.mxu2 %v2648_v35  ;;  %v2425_v35 = vld [vmem:[#allocation6 + $0xf0] sm:$0xf0] }
  0x28   :  { %v2631_v41 = vld [vmem:[#allocation6 + $0x280] sm:$0xf]  ;;  %v3479_v42 = vld [vmem:[#allocation6 + $0x28c] sm:$0xf0]  ;;  %v2504_v46 = vor.u32 %v3447_v40, %v2503_v38  ;;  %1324 = vmatpush.bf16.msra.mxu3 %v2776_v39  ;;  %v3457_v38 = vld [vmem:[#allocation6 + $0x1e4] sm:$0xf] }
  0x29   :  { %v2759_v43 = vld [vmem:[#allocation6 + $0x380] sm:$0xf]  ;;  %v3511_v44 = vld [vmem:[#allocation6 + $0x38c] sm:$0xf0]  ;;  %v2632_v47 = vor.u32 %v3479_v42, %v2631_v41  ;;  %1286 = vmatpush.bf16.msra.mxu0 %v2376_v45  ;;  %v2553_v39 = vld [vmem:[#allocation6 + $0x1f0] sm:$0xf0] }
  0x2a   :  { %v2359_v48 = vld [vmem:[#allocation6 + $0x60] sm:$0xf]  ;;  %v3411_v49 = vld [vmem:[#allocation6 + $0x6c] sm:$0xf0]  ;;  %v2760_v51 = vor.u32 %v3511_v44, %v2759_v43  ;;  %1299 = vmatpush.bf16.msra.mxu1 %v2504_v46  ;;  %v2428_v43 = vor.u32 %v3425_v34, %v2425_v35 }
  0x2b   :  { %v2487_v50 = vld [vmem:[#allocation6 + $0x160] sm:$0xf]  ;;  %v3443_v52 = vld [vmem:[#allocation6 + $0x16c] sm:$0xf0]  ;;  %v2360_v57 = vor.u32 %v3411_v49, %v2359_v48  ;;  %1312 = vmatpush.bf16.msra.mxu2 %v2632_v47  ;;  %v2556_v47 = vor.u32 %v3457_v38, %v2553_v39  ;;  %v3421_v49 = vld [vmem:[#allocation6 + $0xc4] sm:$0xf] }
  0x2c   :  { %v2615_v53 = vld [vmem:[#allocation6 + $0x260] sm:$0xf]  ;;  %v3475_v54 = vld [vmem:[#allocation6 + $0x26c] sm:$0xf0]  ;;  %v2488_v58 = vor.u32 %v3443_v52, %v2487_v50  ;;  %1325 = vmatpush.bf16.msra.mxu3 %v2760_v51  ;;  %v2409_v50 = vld [vmem:[#allocation6 + $0xd0] sm:$0xf0] }
  0x2d   :  { %v2743_v55 = vld [vmem:[#allocation6 + $0x360] sm:$0xf]  ;;  %v3507_v56 = vld [vmem:[#allocation6 + $0x36c] sm:$0xf0]  ;;  %v2616_v59 = vor.u32 %v3475_v54, %v2615_v53  ;;  %1287 = vmatpush.bf16.msra.mxu0 %v2360_v57  ;;  %v3453_v51 = vld [vmem:[#allocation6 + $0x1c4] sm:$0xf] }
  0x2e   :  { %v2343_v60 = vld [vmem:[#allocation6 + $0x40] sm:$0xf]  ;;  %v3407_v61 = vld [vmem:[#allocation6 + $0x4c] sm:$0xf0]  ;;  %v2744_v63 = vor.u32 %v3507_v56, %v2743_v55  ;;  %1300 = vmatpush.bf16.msra.mxu1 %v2488_v58  ;;  %v2537_v52 = vld [vmem:[#allocation6 + $0x1d0] sm:$0xf0]  ;;  %v2412_v56 = vor.u32 %v3421_v49, %v2409_v50 }
  0x2f   :  { %v2471_v62 = vld [vmem:[#allocation6 + $0x140] sm:$0xf]  ;;  %v3439_v0 = vld [vmem:[#allocation6 + $0x14c] sm:$0xf0]  ;;  %v2344_v5 = vor.u32 %v3407_v61, %v2343_v60  ;;  %1313 = vmatpush.bf16.msra.mxu2 %v2616_v59  ;;  %v2540_v60 = vor.u32 %v3453_v51, %v2537_v52  ;;  %v3417_v61 = vld [vmem:[#allocation6 + $0xa4] sm:$0xf] }
  0x30   :  { %v2599_v1 = vld [vmem:[#allocation6 + $0x240] sm:$0xf]  ;;  %v3471_v2 = vld [vmem:[#allocation6 + $0x24c] sm:$0xf0]  ;;  %v2472_v6 = vor.u32 %v3439_v0, %v2471_v62  ;;  %1326 = vmatpush.bf16.msra.mxu3 %v2744_v63  ;;  %v2393_v62 = vld [vmem:[#allocation6 + $0xb0] sm:$0xf0] }
  0x31   :  { %v2727_v3 = vld [vmem:[#allocation6 + $0x340] sm:$0xf]  ;;  %v3503_v4 = vld [vmem:[#allocation6 + $0x34c] sm:$0xf0]  ;;  %v2600_v7 = vor.u32 %v3471_v2, %v2599_v1  ;;  %1288 = vmatpush.bf16.msra.mxu0 %v2344_v5  ;;  %v3449_v63 = vld [vmem:[#allocation6 + $0x1a4] sm:$0xf] }
  0x32   :  { %v2327_v8 = vld [vmem:[#allocation6 + $0x20] sm:$0xf]  ;;  %v3403_v9 = vld [vmem:[#allocation6 + $0x2c] sm:$0xf0]  ;;  %v2728_v11 = vor.u32 %v3503_v4, %v2727_v3  ;;  %1301 = vmatpush.bf16.msra.mxu1 %v2472_v6  ;;  %v2521_v0 = vld [vmem:[#allocation6 + $0x1b0] sm:$0xf0]  ;;  %v2396_v6 = vor.u32 %v3417_v61, %v2393_v62 }
  0x33   :  { %v2455_v10 = vld [vmem:[#allocation6 + $0x120] sm:$0xf]  ;;  %v3435_v12 = vld [vmem:[#allocation6 + $0x12c] sm:$0xf0]  ;;  %v2328_v17 = vor.u32 %v3403_v9, %v2327_v8  ;;  %1314 = vmatpush.bf16.msra.mxu2 %v2600_v7 }
  0x34   :  { %v2583_v13 = vld [vmem:[#allocation6 + $0x220] sm:$0xf]  ;;  %v3467_v14 = vld [vmem:[#allocation6 + $0x22c] sm:$0xf0]  ;;  %v2456_v20 = vor.u32 %v3435_v12, %v2455_v10  ;;  %1327 = vmatpush.bf16.msra.mxu3 %v2728_v11  ;;  %v112_v11 = vld [vmem:[#allocation3 + $0x18] sm:$0xff]  ;;  %v2524_v12 = vor.u32 %v3449_v63, %v2521_v0 }
  0x35   :  { %v2711_v15 = vld [vmem:[#allocation6 + $0x320] sm:$0xf]  ;;  %v3499_v16 = vld [vmem:[#allocation6 + $0x32c] sm:$0xf0]  ;;  %v2584_v21 = vor.u32 %v3467_v14, %v2583_v13  ;;  %1289 = vmatpush.bf16.msra.mxu0 %v2328_v17  ;;  %v3413_v14 = vld [vmem:[#allocation6 + $0x84] sm:$0xf] }
  0x36   :  { %v2311_v18 = vld [vmem:[#allocation6] sm:$0xf]  ;;  %v3399_v19 = vld [vmem:[#allocation6 + $0xc] sm:$0xf0]  ;;  %v2712_v25 = vor.u32 %v3499_v16, %v2711_v15  ;;  %1302 = vmatpush.bf16.msra.mxu1 %v2456_v20  ;;  %v2377_v15 = vld [vmem:[#allocation6 + $0x90] sm:$0xf0]  ;;  %v3921_v16 = vpack.c.bf16 %v112_v11, %v112_v11 }
  0x37   :  { %v2439_v22 = vld [vmem:[#allocation6 + $0x100] sm:$0xf]  ;;  %v3431_v23 = vld [vmem:[#allocation6 + $0x10c] sm:$0xf0]  ;;  %v2312_v32 = vor.u32 %v3399_v19, %v2311_v18  ;;  %1315 = vmatpush.bf16.msra.mxu2 %v2584_v21  ;;  %v3445_v17 = vld [vmem:[#allocation6 + $0x184] sm:$0xf] }
  0x38   :  { %v2567_v24 = vld [vmem:[#allocation6 + $0x200] sm:$0xf]  ;;  %v3463_v26 = vld [vmem:[#allocation6 + $0x20c] sm:$0xf0]  ;;  %v2440_v36 = vor.u32 %v3431_v23, %v2439_v22  ;;  %1328 = vmatpush.bf16.msra.mxu3 %v2712_v25  ;;  %v2505_v18 = vld [vmem:[#allocation6 + $0x190] sm:$0xf0]  ;;  %v2380_v22 = vor.u32 %v3413_v14, %v2377_v15 }
  0x39   :  { %v2695_v27 = vld [vmem:[#allocation6 + $0x300] sm:$0xf]  ;;  %v3495_v28 = vld [vmem:[#allocation6 + $0x30c] sm:$0xf0]  ;;  %v2568_v37 = vor.u32 %v3463_v26, %v2567_v24  ;;  %1290 = vmatpush.bf16.msra.mxu0 %v2312_v32  ;;  %v110_v20 = vld [vmem:[#allocation3 + $0x8] sm:$0xff] }
  0x3a   :  { %v2935_v29 = vld [vmem:[#allocation6 + $0x4e0] sm:$0xf]  ;;  %v3555_v30 = vld [vmem:[#allocation6 + $0x4ec] sm:$0xf0]  ;;  %v2696_v40 = vor.u32 %v3495_v28, %v2695_v27  ;;  %1303 = vmatpush.bf16.msra.mxu1 %v2440_v36  ;;  %v3926_v26 = vpack.c.bf16 %v110_v20, %v110_v20  ;;  %v2508_v27 = vor.u32 %v3445_v17, %v2505_v18  ;;  %v2489_v32 = vld [vmem:[#allocation6 + $0x170] sm:$0xf0] }
  0x3b   :  { %v3063_v31 = vld [vmem:[#allocation6 + $0x5e0] sm:$0xf]  ;;  %v3587_v33 = vld [vmem:[#allocation6 + $0x5ec] sm:$0xf0]  ;;  %v2936_v41 = vor.u32 %v3555_v30, %v2935_v29  ;;  %1316 = vmatpush.bf16.msra.mxu2 %v2568_v37  ;;  %v3409_v29 = vld [vmem:[#allocation6 + $0x64] sm:$0xf] }
  0x3c   :  { %v3064_v42 = vor.u32 %v3587_v33, %v3063_v31  ;;  %v2919_v44 = vld [vmem:[#allocation6 + $0x4c0] sm:$0xf]  ;;  %v3551_v45 = vld [vmem:[#allocation6 + $0x4cc] sm:$0xf0]  ;;  %1329 = vmatpush.bf16.msra.mxu3 %v2696_v40  ;;  %v2361_v30 = vld [vmem:[#allocation6 + $0x70] sm:$0xf0] }
  0x3d   :  { %v3047_v46 = vld [vmem:[#allocation6 + $0x5c0] sm:$0xf]  ;;  %v3583_v48 = vld [vmem:[#allocation6 + $0x5cc] sm:$0xf0]  ;;  %1335 = vmatpush.bf16.msrb.mxu0 %v2936_v41  ;;  %v2920_v53 = vor.u32 %v3551_v45, %v2919_v44  ;;  %v3441_v31 = vld [vmem:[#allocation6 + $0x164] sm:$0xf]  ;;  %1304 = vmatmul.bf16.vlgmr.msra.gmra.mxu1 %v3926_v26  ;;  %v2364_v35 = vor.u32 %v3409_v29, %v2361_v30 }
  0x3e   :  { %v2903_v54 = vld [vmem:[#allocation6 + $0x4a0] sm:$0xf]  ;;  %1348 = vmatpush.bf16.msrb.mxu1 %v3064_v42  ;;  %v3048_v55 = vor.u32 %v3583_v48, %v3047_v46  ;;  %v3547_v57 = vld [vmem:[#allocation6 + $0x4ac] sm:$0xf0]  ;;  %v2492_v39 = vor.u32 %v3441_v31, %v2489_v32  ;;  %v3405_v41 = vld [vmem:[#allocation6 + $0x44] sm:$0xf] }
  0x3f   :  { %1361 = vmatpush.bf16.msrb.mxu2 %v2428_v43  ;;  %v3031_v58 = vld [vmem:[#allocation6 + $0x5a0] sm:$0xf]  ;;  %v3579_v59 = vld [vmem:[#allocation6 + $0x5ac] sm:$0xf0]  ;;  %v2904_v1 = vor.u32 %v3547_v57, %v2903_v54  ;;  %1330 = vmatmul.bf16.vlgmr.msra.gmra.mxu3 %v3921_v16  ;;  %v2345_v42 = vld [vmem:[#allocation6 + $0x50] sm:$0xf0] }
  0x40   :  { %1374 = vmatpush.bf16.msrb.mxu3 %v2556_v47  ;;  %v3032_v2 = vor.u32 %v3579_v59, %v3031_v58  ;;  %v2887_v3 = vld [vmem:[#allocation6 + $0x480] sm:$0xf]  ;;  %v109_v5 = vld [vmem:[#allocation3] sm:$0xff]  ;;  %v3437_v43 = vld [vmem:[#allocation6 + $0x144] sm:$0xf]  ;;  %v2348_v47 = vor.u32 %v3405_v41, %v2345_v42 }
  0x41   :  { %1336 = vmatpush.bf16.msrb.mxu0 %v2920_v53  ;;  %v111_v4 = vld [vmem:[#allocation3 + $0x10] sm:$0xff]  ;;  %v3543_v7 = vld [vmem:[#allocation6 + $0x48c] sm:$0xf0]  ;;  %v3919_v10 = vpack.c.bf16 %v109_v5, %v109_v5  ;;  %v2473_v44 = vld [vmem:[#allocation6 + $0x150] sm:$0xf0] }
  0x42   :  { %1349 = vmatpush.bf16.msrb.mxu1 %v3048_v55  ;;  %v3015_v8 = vld [vmem:[#allocation6 + $0x580] sm:$0xf]  ;;  %v3917_v9 = vpack.c.bf16 %v111_v4, %v111_v4  ;;  %v3575_v13 = vld [vmem:[#allocation6 + $0x58c] sm:$0xf0]  ;;  %v2888_v19 = vor.u32 %v3543_v7, %v2887_v3  ;;  %v2476_v51 = vor.u32 %v3437_v43, %v2473_v44  ;;  %v3401_v53 = vld [vmem:[#allocation6 + $0x24] sm:$0xf] }
  0x43   :  { %1362 = vmatpush.bf16.msrb.mxu2 %v2412_v56  ;;  %1291 = vmatmul.bf16.vlgmr.msra.gmra.mxu0 %v3919_v10  ;;  %v3016_v21 = vor.u32 %v3575_v13, %v3015_v8  ;;  %v2871_v23 = vld [vmem:[#allocation6 + $0x460] sm:$0xf]  ;;  %v3539_v24 = vld [vmem:[#allocation6 + $0x46c] sm:$0xf0]  ;;  %v2329_v54 = vld [vmem:[#allocation6 + $0x30] sm:$0xf0] }
  0x44   :  { %1375 = vmatpush.bf16.msrb.mxu3 %v2540_v60  ;;  %1317 = vmatmul.bf16.vlgmr.msra.gmra.mxu2 %v3917_v9  ;;  %v2999_v25 = vld [vmem:[#allocation6 + $0x560] sm:$0xf]  ;;  %v3571_v28 = vld [vmem:[#allocation6 + $0x56c] sm:$0xf0]  ;;  %v2872_v33 = vor.u32 %v3539_v24, %v2871_v23  ;;  %v3433_v55 = vld [vmem:[#allocation6 + $0x124] sm:$0xf]  ;;  %v2332_v61 = vor.u32 %v3401_v53, %v2329_v54 }
  0x45   :  { %1337 = vmatpush.bf16.msrb.mxu0 %v2904_v1  ;;  %v3000_v34 = vor.u32 %v3571_v28, %v2999_v25  ;;  %v2855_v36 = vld [vmem:[#allocation6 + $0x440] sm:$0xf]  ;;  %v3535_v37 = vld [vmem:[#allocation6 + $0x44c] sm:$0xf0]  ;;  %v2457_v56 = vld [vmem:[#allocation6 + $0x130] sm:$0xf0] }
  0x46   :  { %1350 = vmatpush.bf16.msrb.mxu1 %v3032_v2  ;;  %v2983_v38 = vld [vmem:[#allocation6 + $0x540] sm:$0xf]  ;;  %v3567_v40 = vld [vmem:[#allocation6 + $0x54c] sm:$0xf0]  ;;  %v2856_v45 = vor.u32 %v3535_v37, %v2855_v36  ;;  %v3397_v0 = vld [vmem:[#allocation6 + $0x4] sm:$0xf]  ;;  %v2460_v1 = vor.u32 %v3433_v55, %v2457_v56 }
  0x47   :  { %1363 = vmatpush.bf16.msrb.mxu2 %v2396_v6  ;;  %v2984_v46 = vor.u32 %v3567_v40, %v2983_v38  ;;  %v2839_v48 = vld [vmem:[#allocation6 + $0x420] sm:$0xf]  ;;  %v3531_v49 = vld [vmem:[#allocation6 + $0x42c] sm:$0xf0]  ;;  %v2313_v2 = vld [vmem:[#allocation6 + $0x10] sm:$0xf0] }
  0x48   :  { %1376 = vmatpush.bf16.msrb.mxu3 %v2524_v12  ;;  %v2967_v50 = vld [vmem:[#allocation6 + $0x520] sm:$0xf]  ;;  %v3563_v52 = vld [vmem:[#allocation6 + $0x52c] sm:$0xf0]  ;;  %v2840_v57 = vor.u32 %v3531_v49, %v2839_v48  ;;  %v3429_v3 = vld [vmem:[#allocation6 + $0x104] sm:$0xf]  ;;  %v2316_v15 = vor.u32 %v3397_v0, %v2313_v2 }
  0x49   :  { %1338 = vmatpush.bf16.msrb.mxu0 %v2888_v19  ;;  %v2823_v58 = vld [vmem:[#allocation6 + $0x400] sm:$0xf]  ;;  %v3527_v59 = vld [vmem:[#allocation6 + $0x40c] sm:$0xf0]  ;;  %v2968_v60 = vor.u32 %v3563_v52, %v2967_v50  ;;  %v2441_v4 = vld [vmem:[#allocation6 + $0x110] sm:$0xf0] }
  0x4a   :  { %1351 = vmatpush.bf16.msrb.mxu1 %v3016_v21  ;;  %v2951_v62 = vld [vmem:[#allocation6 + $0x500] sm:$0xf]  ;;  %v3559_v63 = vld [vmem:[#allocation6 + $0x50c] sm:$0xf0]  ;;  %v3489_v5 = vld [vmem:[#allocation6 + $0x2e4] sm:$0xf]  ;;  %v2824_v8 = vor.u32 %v3527_v59, %v2823_v58  ;;  %v2444_v20 = vor.u32 %v3429_v3, %v2441_v4 }
  0x4b   :  { %1364 = vmatpush.bf16.msrb.mxu2 %v2380_v22  ;;  %v2681_v6 = vld [vmem:[#allocation6 + $0x2f0] sm:$0xf0]  ;;  %v3521_v7 = vld [vmem:[#allocation6 + $0x3e4] sm:$0xf]  ;;  %v2952_v14 = vor.u32 %v3559_v63, %v2951_v62  ;;  %v114_v22 = vld [vmem:[#allocation3 + $0x28] sm:$0xff] }
  0x4c   :  { %1377 = vmatpush.bf16.msrb.mxu3 %v2508_v27  ;;  %v2809_v11 = vld [vmem:[#allocation6 + $0x3f0] sm:$0xf0]  ;;  %v3553_v12 = vld [vmem:[#allocation6 + $0x4e4] sm:$0xf]  ;;  %v2684_v21 = vor.u32 %v3489_v5, %v2681_v6  ;;  %v3931_v36 = vpack.c.bf16 %v114_v22, %v114_v22 }
  0x4d   :  { %1339 = vmatpush.bf16.msrb.mxu0 %v2872_v33  ;;  %v2937_v13 = vld [vmem:[#allocation6 + $0x4f0] sm:$0xf0]  ;;  %v3585_v17 = vld [vmem:[#allocation6 + $0x5e4] sm:$0xf]  ;;  %v2812_v23 = vor.u32 %v3521_v7, %v2809_v11 }
  0x4e   :  { %1352 = vmatpush.bf16.msrb.mxu1 %v3000_v34  ;;  %v3065_v18 = vld [vmem:[#allocation6 + $0x5f0] sm:$0xf0]  ;;  %v2940_v24 = vor.u32 %v3553_v12, %v2937_v13  ;;  %v3485_v25 = vld [vmem:[#allocation6 + $0x2c4] sm:$0xf] }
  0x4f   :  { %1365 = vmatpush.bf16.msrb.mxu2 %v2364_v35  ;;  %v113_v19 = vld [vmem:[#allocation3 + $0x20] sm:$0xff]  ;;  %v3517_v28 = vld [vmem:[#allocation6 + $0x3c4] sm:$0xf]  ;;  %v3068_v29 = vor.u32 %v3585_v17, %v3065_v18 }
  0x50   :  { %1378 = vmatpush.bf16.msrb.mxu3 %v2492_v39  ;;  %v2665_v27 = vld [vmem:[#allocation6 + $0x2d0] sm:$0xf0]  ;;  %v3549_v31 = vld [vmem:[#allocation6 + $0x4c4] sm:$0xf]  ;;  %v3929_v33 = vpack.c.bf16 %v113_v19, %v113_v19 }
  0x51   :  { %1340 = vmatpush.bf16.msrb.mxu0 %v2856_v45  ;;  %v2793_v30 = vld [vmem:[#allocation6 + $0x3d0] sm:$0xf0]  ;;  %v3581_v34 = vld [vmem:[#allocation6 + $0x5c4] sm:$0xf]  ;;  %v2668_v37 = vor.u32 %v3485_v25, %v2665_v27 }
  0x52   :  { %1353 = vmatpush.bf16.msrb.mxu1 %v2984_v46  ;;  %v2921_v32 = vld [vmem:[#allocation6 + $0x4d0] sm:$0xf0]  ;;  %v2796_v38 = vor.u32 %v3517_v28, %v2793_v30  ;;  %v3481_v40 = vld [vmem:[#allocation6 + $0x2a4] sm:$0xf] }
  0x53   :  { %1366 = vmatpush.bf16.msrb.mxu2 %v2348_v47  ;;  %v3049_v35 = vld [vmem:[#allocation6 + $0x5d0] sm:$0xf0]  ;;  %v2924_v39 = vor.u32 %v3549_v31, %v2921_v32  ;;  %v3513_v42 = vld [vmem:[#allocation6 + $0x3a4] sm:$0xf] }
  0x54   :  { %1379 = vmatpush.bf16.msrb.mxu3 %v2476_v51  ;;  %v2649_v41 = vld [vmem:[#allocation6 + $0x2b0] sm:$0xf0]  ;;  %v3052_v43 = vor.u32 %v3581_v34, %v3049_v35  ;;  %v3545_v45 = vld [vmem:[#allocation6 + $0x4a4] sm:$0xf] }
  0x55   :  { %1341 = vmatpush.bf16.msrb.mxu0 %v2840_v57  ;;  %v2777_v44 = vld [vmem:[#allocation6 + $0x3b0] sm:$0xf0]  ;;  %v3577_v47 = vld [vmem:[#allocation6 + $0x5a4] sm:$0xf]  ;;  %v2652_v49 = vor.u32 %v3481_v40, %v2649_v41 }
  0x56   :  { %1354 = vmatpush.bf16.msrb.mxu1 %v2968_v60  ;;  %v2905_v46 = vld [vmem:[#allocation6 + $0x4b0] sm:$0xf0]  ;;  %v2780_v50 = vor.u32 %v3513_v42, %v2777_v44  ;;  %v3477_v52 = vld [vmem:[#allocation6 + $0x284] sm:$0xf] }
  0x57   :  { %1367 = vmatpush.bf16.msrb.mxu2 %v2332_v61  ;;  %v3033_v48 = vld [vmem:[#allocation6 + $0x5b0] sm:$0xf0]  ;;  %v2908_v51 = vor.u32 %v3545_v45, %v2905_v46  ;;  %v3509_v54 = vld [vmem:[#allocation6 + $0x384] sm:$0xf] }
  0x58   :  { %1380 = vmatpush.bf16.msrb.mxu3 %v2460_v1  ;;  %v2633_v53 = vld [vmem:[#allocation6 + $0x290] sm:$0xf0]  ;;  %v3036_v55 = vor.u32 %v3577_v47, %v3033_v48  ;;  %v3541_v57 = vld [vmem:[#allocation6 + $0x484] sm:$0xf] }
  0x59   :  { %1342 = vmatpush.bf16.msrb.mxu0 %v2824_v8  ;;  %v2761_v56 = vld [vmem:[#allocation6 + $0x390] sm:$0xf0]  ;;  %v3573_v59 = vld [vmem:[#allocation6 + $0x584] sm:$0xf]  ;;  %v2636_v61 = vor.u32 %v3477_v52, %v2633_v53  ;;  %v3428_v52 = vld [vmem:[#allocation6 + $0xf4] sm:$0xf0] }
  0x5a   :  { %1355 = vmatpush.bf16.msrb.mxu1 %v2952_v14  ;;  %v2889_v58 = vld [vmem:[#allocation6 + $0x490] sm:$0xf0]  ;;  %v2764_v62 = vor.u32 %v3509_v54, %v2761_v56  ;;  %v3473_v0 = vld [vmem:[#allocation6 + $0x264] sm:$0xf]  ;;  %v2559_v53 = vld [vmem:[#allocation6 + $0x1e8] sm:$0xf] }
  0x5b   :  { %1368 = vmatpush.bf16.msrb.mxu2 %v2316_v15  ;;  %v3017_v60 = vld [vmem:[#allocation6 + $0x590] sm:$0xf0]  ;;  %v2892_v63 = vor.u32 %v3541_v57, %v2889_v58  ;;  %v3505_v2 = vld [vmem:[#allocation6 + $0x364] sm:$0xf]  ;;  %v2687_v56 = vld [vmem:[#allocation6 + $0x2e8] sm:$0xf] }
  0x5c   :  { %1381 = vmatpush.bf16.msrb.mxu3 %v2444_v20  ;;  %1343 = vmatmul.bf16.vlgmr.msrb.gmra.mxu0 %v3929_v33  ;;  %v2617_v1 = vld [vmem:[#allocation6 + $0x270] sm:$0xf0]  ;;  %v3020_v3 = vor.u32 %v3573_v59, %v3017_v60  ;;  %v3537_v5 = vld [vmem:[#allocation6 + $0x464] sm:$0xf]  ;;  %v3492_v57 = vld [vmem:[#allocation6 + $0x2f4] sm:$0xf0] }
  0x5d   :  { %1387 = vmatpush.bf16.msra.mxu0 %v2684_v21  ;;  %1356 = vmatmul.bf16.vlgmr.msrb.gmra.mxu1 %v3931_v36  ;;  %v2745_v4 = vld [vmem:[#allocation6 + $0x370] sm:$0xf0]  ;;  %v3569_v7 = vld [vmem:[#allocation6 + $0x564] sm:$0xf]  ;;  %v2620_v11 = vor.u32 %v3473_v0, %v2617_v1  ;;  %v2815_v60 = vld [vmem:[#allocation6 + $0x3e8] sm:$0xf]  ;;  %v2688_v1 = vor.u32 %v3492_v57, %v2687_v56 }
  0x5e   :  { %1400 = vmatpush.bf16.msra.mxu1 %v2812_v23  ;;  %1369 = vmatmul.bf16.vlgmr.msrb.gmra.mxu2 %v3919_v10  ;;  %v2873_v6 = vld [vmem:[#allocation6 + $0x470] sm:$0xf0]  ;;  %v2748_v12 = vor.u32 %v3505_v2, %v2745_v4  ;;  %v3469_v14 = vld [vmem:[#allocation6 + $0x244] sm:$0xf]  ;;  %v2415_v2 = vld [vmem:[#allocation6 + $0xc8] sm:$0xf] }
  0x5f   :  { %1413 = vmatpush.bf16.msra.mxu2 %v2940_v24  ;;  %1382 = vmatmul.bf16.vlgmr.msrb.gmra.mxu3 %v3926_v26  ;;  %v3001_v8 = vld [vmem:[#allocation6 + $0x570] sm:$0xf0]  ;;  %v2876_v13 = vor.u32 %v3537_v5, %v2873_v6  ;;  %v3501_v17 = vld [vmem:[#allocation6 + $0x344] sm:$0xf]  ;;  %v2543_v4 = vld [vmem:[#allocation6 + $0x1c8] sm:$0xf] }
  0x60   :  { %1426 = vmatpush.bf16.msra.mxu3 %v3068_v29  ;;  %v2601_v15 = vld [vmem:[#allocation6 + $0x250] sm:$0xf0]  ;;  %v3004_v18 = vor.u32 %v3569_v7, %v3001_v8  ;;  %v3533_v20 = vld [vmem:[#allocation6 + $0x444] sm:$0xf]  ;;  %v3456_v6 = vld [vmem:[#allocation6 + $0x1d4] sm:$0xf0] }
  0x61   :  { %1388 = vmatpush.bf16.msra.mxu0 %v2668_v37  ;;  %v2729_v19 = vld [vmem:[#allocation6 + $0x350] sm:$0xf0]  ;;  %v3565_v22 = vld [vmem:[#allocation6 + $0x544] sm:$0xf]  ;;  %v2604_v24 = vor.u32 %v3469_v14, %v2601_v15  ;;  %v2671_v7 = vld [vmem:[#allocation6 + $0x2c8] sm:$0xf]  ;;  %v2544_v14 = vor.u32 %v3456_v6, %v2543_v4 }
  0x62   :  { %1401 = vmatpush.bf16.msra.mxu1 %v2796_v38  ;;  %v2857_v21 = vld [vmem:[#allocation6 + $0x450] sm:$0xf0]  ;;  %v2732_v25 = vor.u32 %v3501_v17, %v2729_v19  ;;  %v3465_v28 = vld [vmem:[#allocation6 + $0x224] sm:$0xf]  ;;  %v3488_v8 = vld [vmem:[#allocation6 + $0x2d4] sm:$0xf0] }
  0x63   :  { %1414 = vmatpush.bf16.msra.mxu2 %v2924_v39  ;;  %v2985_v23 = vld [vmem:[#allocation6 + $0x550] sm:$0xf0]  ;;  %v2860_v27 = vor.u32 %v3533_v20, %v2857_v21  ;;  %v3497_v30 = vld [vmem:[#allocation6 + $0x324] sm:$0xf]  ;;  %v2672_v15 = vor.u32 %v3488_v8, %v2671_v7  ;;  %v2399_v17 = vld [vmem:[#allocation6 + $0xa8] sm:$0xf] }
  0x64   :  { %1427 = vmatpush.bf16.msra.mxu3 %v3052_v43  ;;  %v2585_v29 = vld [vmem:[#allocation6 + $0x230] sm:$0xf0]  ;;  %v2988_v31 = vor.u32 %v3565_v22, %v2985_v23  ;;  %v3529_v34 = vld [vmem:[#allocation6 + $0x424] sm:$0xf]  ;;  %v2527_v19 = vld [vmem:[#allocation6 + $0x1a8] sm:$0xf] }
  0x65   :  { %1389 = vmatpush.bf16.msra.mxu0 %v2652_v49  ;;  %v2713_v32 = vld [vmem:[#allocation6 + $0x330] sm:$0xf0]  ;;  %v3561_v37 = vld [vmem:[#allocation6 + $0x524] sm:$0xf]  ;;  %v2588_v39 = vor.u32 %v3465_v28, %v2585_v29  ;;  %v3452_v21 = vld [vmem:[#allocation6 + $0x1b4] sm:$0xf0] }
  0x66   :  { %1402 = vmatpush.bf16.msra.mxu1 %v2780_v50  ;;  %v2841_v35 = vld [vmem:[#allocation6 + $0x430] sm:$0xf0]  ;;  %v3461_v40 = vld [vmem:[#allocation6 + $0x204] sm:$0xf]  ;;  %v2716_v42 = vor.u32 %v3497_v30, %v2713_v32  ;;  %v2655_v22 = vld [vmem:[#allocation6 + $0x2a8] sm:$0xf]  ;;  %v2528_v28 = vor.u32 %v3452_v21, %v2527_v19 }
  0x67   :  { %1415 = vmatpush.bf16.msra.mxu2 %v2908_v51  ;;  %v2969_v38 = vld [vmem:[#allocation6 + $0x530] sm:$0xf0]  ;;  %v2844_v43 = vor.u32 %v3529_v34, %v2841_v35  ;;  %v3493_v44 = vld [vmem:[#allocation6 + $0x304] sm:$0xf]  ;;  %v2431_v51 = vld [vmem:[#allocation6 + $0xe8] sm:$0xf] }
  0x68   :  { %1428 = vmatpush.bf16.msra.mxu3 %v3036_v55  ;;  %v2569_v41 = vld [vmem:[#allocation6 + $0x210] sm:$0xf0]  ;;  %v3525_v46 = vld [vmem:[#allocation6 + $0x404] sm:$0xf]  ;;  %v2972_v47 = vor.u32 %v3561_v37, %v2969_v38  ;;  %v3460_v55 = vld [vmem:[#allocation6 + $0x1f4] sm:$0xf0] }
  0x69   :  { %1390 = vmatpush.bf16.msra.mxu0 %v2636_v61  ;;  %v2697_v45 = vld [vmem:[#allocation6 + $0x310] sm:$0xf0]  ;;  %v3557_v49 = vld [vmem:[#allocation6 + $0x504] sm:$0xf]  ;;  %v2572_v54 = vor.u32 %v3461_v40, %v2569_v41  ;;  %v3524_v61 = vld [vmem:[#allocation6 + $0x3f4] sm:$0xf0]  ;;  %v2560_v0 = vor.u32 %v3460_v55, %v2559_v53 }
  0x6a   :  { %1403 = vmatpush.bf16.msra.mxu1 %v2764_v62  ;;  %v2825_v48 = vld [vmem:[#allocation6 + $0x410] sm:$0xf0]  ;;  %v2700_v58 = vor.u32 %v3493_v44, %v2697_v45  ;;  %v2816_v5 = vor.u32 %v3524_v61, %v2815_v60  ;;  %v3484_v23 = vld [vmem:[#allocation6 + $0x2b4] sm:$0xf0]  ;;  %v2383_v30 = vld [vmem:[#allocation6 + $0x88] sm:$0xf] }
  0x6b   :  { %1416 = vmatpush.bf16.msra.mxu2 %v2892_v63  ;;  %v2953_v50 = vld [vmem:[#allocation6 + $0x510] sm:$0xf0]  ;;  %v2828_v59 = vor.u32 %v3525_v46, %v2825_v48  ;;  %v2432_v63 = vor.u32 %v3428_v52, %v2431_v51  ;;  %v2656_v29 = vor.u32 %v3484_v23, %v2655_v22  ;;  %v2511_v32 = vld [vmem:[#allocation6 + $0x188] sm:$0xf]  ;;  %v3448_v35 = vld [vmem:[#allocation6 + $0x194] sm:$0xf0] }
  0x6c   :  { %1429 = vmatpush.bf16.msra.mxu3 %v3020_v3  ;;  %v2956_v62 = vor.u32 %v3557_v49, %v2953_v50  ;;  %v3424_v3 = vld [vmem:[#allocation6 + $0xd4] sm:$0xf0]  ;;  %v2639_v37 = vld [vmem:[#allocation6 + $0x288] sm:$0xf] }
  0x6d   :  { %1391 = vmatpush.bf16.msra.mxu0 %v2620_v11  ;;  %v2799_v11 = vld [vmem:[#allocation6 + $0x3c8] sm:$0xf]  ;;  %v3480_v38 = vld [vmem:[#allocation6 + $0x294] sm:$0xf0] }
  0x6e   :  { %1404 = vmatpush.bf16.msra.mxu1 %v2748_v12  ;;  %v3520_v12 = vld [vmem:[#allocation6 + $0x3d4] sm:$0xf0]  ;;  %v2367_v44 = vld [vmem:[#allocation6 + $0x68] sm:$0xf] }
  0x6f   :  { %1417 = vmatpush.bf16.msra.mxu2 %v2876_v13  ;;  %v2416_v13 = vor.u32 %v3424_v3, %v2415_v2  ;;  %v2800_v20 = vor.u32 %v3520_v12, %v2799_v11  ;;  %v3512_v40 = vld [vmem:[#allocation6 + $0x394] sm:$0xf0]  ;;  %v2495_v46 = vld [vmem:[#allocation6 + $0x168] sm:$0xf] }
  0x70   :  { %1430 = vmatpush.bf16.msra.mxu3 %v3004_v18  ;;  %v3420_v18 = vld [vmem:[#allocation6 + $0xb4] sm:$0xf0]  ;;  %v2623_v49 = vld [vmem:[#allocation6 + $0x268] sm:$0xf] }
  0x71   :  { %1392 = vmatpush.bf16.msra.mxu0 %v2604_v24  ;;  %v2783_v24 = vld [vmem:[#allocation6 + $0x3a8] sm:$0xf]  ;;  %v3412_v45 = vld [vmem:[#allocation6 + $0x74] sm:$0xf0] }
  0x72   :  { %1405 = vmatpush.bf16.msra.mxu1 %v2732_v25  ;;  %v3516_v25 = vld [vmem:[#allocation6 + $0x3b4] sm:$0xf0]  ;;  %v2751_v51 = vld [vmem:[#allocation6 + $0x368] sm:$0xf]  ;;  %v2368_v53 = vor.u32 %v3412_v45, %v2367_v44 }
  0x73   :  { %1418 = vmatpush.bf16.msra.mxu2 %v2860_v27  ;;  %v2400_v27 = vor.u32 %v3420_v18, %v2399_v17  ;;  %v2784_v34 = vor.u32 %v3516_v25, %v2783_v24  ;;  %v3444_v48 = vld [vmem:[#allocation6 + $0x174] sm:$0xf0]  ;;  %v2351_v56 = vld [vmem:[#allocation6 + $0x48] sm:$0xf] }
  0x74   :  { %1431 = vmatpush.bf16.msra.mxu3 %v2988_v31  ;;  %v3416_v31 = vld [vmem:[#allocation6 + $0x94] sm:$0xf0]  ;;  %v2607_v61 = vld [vmem:[#allocation6 + $0x248] sm:$0xf] }
  0x75   :  { %1393 = vmatpush.bf16.msra.mxu0 %v2588_v39  ;;  %v2767_v39 = vld [vmem:[#allocation6 + $0x388] sm:$0xf]  ;;  %v2384_v41 = vor.u32 %v3416_v31, %v2383_v30  ;;  %v3476_v50 = vld [vmem:[#allocation6 + $0x274] sm:$0xf0] }
  0x76   :  { %1406 = vmatpush.bf16.msra.mxu1 %v2716_v42  ;;  %v2512_v42 = vor.u32 %v3448_v35, %v2511_v32  ;;  %v3508_v52 = vld [vmem:[#allocation6 + $0x374] sm:$0xf0]  ;;  %v2624_v55 = vor.u32 %v3476_v50, %v2623_v49  ;;  %v2335_v4 = vld [vmem:[#allocation6 + $0x28] sm:$0xf]  ;;  %v3426_v35 = vld [vmem:[#allocation6 + $0xec] sm:$0xf] }
  0x77   :  { %1419 = vmatpush.bf16.msra.mxu2 %v2844_v43  ;;  %v2640_v43 = vor.u32 %v3480_v38, %v2639_v37  ;;  %v3408_v57 = vld [vmem:[#allocation6 + $0x54] sm:$0xf0]  ;;  %v2463_v6 = vld [vmem:[#allocation6 + $0x128] sm:$0xf]  ;;  %v2433_v37 = vld [vmem:[#allocation6 + $0xf8] sm:$0xf0] }
  0x78   :  { %1432 = vmatpush.bf16.msra.mxu3 %v2972_v47  ;;  %v2768_v47 = vor.u32 %v3512_v40, %v2767_v39  ;;  %v3440_v60 = vld [vmem:[#allocation6 + $0x154] sm:$0xf0]  ;;  %v2591_v11 = vld [vmem:[#allocation6 + $0x228] sm:$0xf]  ;;  %v3458_v40 = vld [vmem:[#allocation6 + $0x1ec] sm:$0xf]  ;;  %v2436_v45 = vor.u32 %v3426_v35, %v2433_v37 }
  0x79   :  { %1394 = vmatpush.bf16.msra.mxu0 %v2572_v54  ;;  %v2496_v54 = vor.u32 %v3444_v48, %v2495_v46  ;;  %v3436_v8 = vld [vmem:[#allocation6 + $0x134] sm:$0xf0]  ;;  %v2319_v17 = vld [vmem:[#allocation6 + $0x8] sm:$0xf] }
  0x7a   :  { %1407 = vmatpush.bf16.msra.mxu1 %v2700_v58  ;;  %v2479_v58 = vld [vmem:[#allocation6 + $0x148] sm:$0xf]  ;;  %v3468_v12 = vld [vmem:[#allocation6 + $0x234] sm:$0xf0]  ;;  %v2464_v19 = vor.u32 %v3436_v8, %v2463_v6 }
  0x7b   :  { %1420 = vmatpush.bf16.msra.mxu2 %v2828_v59  ;;  %v2752_v59 = vor.u32 %v3508_v52, %v2751_v51  ;;  %v2480_v2 = vor.u32 %v3440_v60, %v2479_v58  ;;  %v3400_v18 = vld [vmem:[#allocation6 + $0x14] sm:$0xf0]  ;;  %v2447_v21 = vld [vmem:[#allocation6 + $0x108] sm:$0xf]  ;;  %v3422_v51 = vld [vmem:[#allocation6 + $0xcc] sm:$0xf] }
  0x7c   :  { %1433 = vmatpush.bf16.msra.mxu3 %v2956_v62  ;;  %1395 = vmatmul.bf16.vlgmr.msra.gmra.mxu0 %v3917_v9  ;;  %v3472_v62 = vld [vmem:[#allocation6 + $0x254] sm:$0xf0]  ;;  %v2575_v23 = vld [vmem:[#allocation6 + $0x208] sm:$0xf]  ;;  %v2320_v32 = vor.u32 %v3400_v18, %v2319_v17  ;;  %v2417_v52 = vld [vmem:[#allocation6 + $0xd8] sm:$0xf0] }
  0x7d   :  { %1439 = vmatpush.bf16.msrb.mxu0 %v2432_v63  ;;  %1408 = vmatmul.bf16.vlgmr.msra.gmra.mxu1 %v3921_v16  ;;  %v2735_v63 = vld [vmem:[#allocation6 + $0x348] sm:$0xf]  ;;  %v2608_v3 = vor.u32 %v3472_v62, %v2607_v61  ;;  %v3432_v22 = vld [vmem:[#allocation6 + $0x114] sm:$0xf0]  ;;  %v2513_v17 = vld [vmem:[#allocation6 + $0x198] sm:$0xf0] }
  0x7e   :  { %1452 = vmatpush.bf16.msrb.mxu1 %v2560_v0  ;;  %1421 = vmatmul.bf16.vlgmr.msra.gmra.mxu2 %v3929_v33  ;;  %v3504_v0 = vld [vmem:[#allocation6 + $0x354] sm:$0xf0]  ;;  %v3071_v31 = vld [vmem:[#allocation6 + $0x5e8] sm:$0xf]  ;;  %v2448_v38 = vor.u32 %v3432_v22, %v2447_v21 }
  0x7f   :  { %1465 = vmatpush.bf16.msrb.mxu2 %v2688_v1  ;;  %1434 = vmatmul.bf16.vlgmr.msra.gmra.mxu3 %v3931_v36  ;;  %v2352_v1 = vor.u32 %v3408_v57, %v2351_v56  ;;  %v2736_v7 = vor.u32 %v3504_v0, %v2735_v63  ;;  %v3464_v25 = vld [vmem:[#allocation6 + $0x214] sm:$0xf0]  ;;  %v2927_v46 = vld [vmem:[#allocation6 + $0x4c8] sm:$0xf]  ;;  %v2420_v57 = vor.u32 %v3422_v51, %v2417_v52  ;;  %v3418_v63 = vld [vmem:[#allocation6 + $0xac] sm:$0xf] }
  0x80   :  { %1478 = vmatpush.bf16.msrb.mxu3 %v2816_v5  ;;  %v3404_v5 = vld [vmem:[#allocation6 + $0x34] sm:$0xf0]  ;;  %v2576_v39 = vor.u32 %v3464_v25, %v2575_v23  ;;  %v3055_v48 = vld [vmem:[#allocation6 + $0x5c8] sm:$0xf]  ;;  %v2401_v0 = vld [vmem:[#allocation6 + $0xb8] sm:$0xf0] }
  0x81   :  { %1440 = vmatpush.bf16.msrb.mxu0 %v2416_v13  ;;  %v2719_v13 = vld [vmem:[#allocation6 + $0x328] sm:$0xf]  ;;  %v3556_v30 = vld [vmem:[#allocation6 + $0x4f4] sm:$0xf0] }
  0x82   :  { %1453 = vmatpush.bf16.msrb.mxu1 %v2544_v14  ;;  %v3500_v14 = vld [vmem:[#allocation6 + $0x334] sm:$0xf0]  ;;  %v2911_v58 = vld [vmem:[#allocation6 + $0x4a8] sm:$0xf] }
  0x83   :  { %1466 = vmatpush.bf16.msrb.mxu2 %v2672_v15  ;;  %v2336_v15 = vor.u32 %v3404_v5, %v2335_v4  ;;  %v2720_v24 = vor.u32 %v3500_v14, %v2719_v13  ;;  %v3584_v50 = vld [vmem:[#allocation6 + $0x5d4] sm:$0xf0]  ;;  %v3039_v60 = vld [vmem:[#allocation6 + $0x5a8] sm:$0xf]  ;;  %v2404_v5 = vor.u32 %v3418_v63, %v2401_v0  ;;  %v3414_v13 = vld [vmem:[#allocation6 + $0x8c] sm:$0xf] }
  0x84   :  { %1479 = vmatpush.bf16.msrb.mxu3 %v2800_v20  ;;  %v2592_v20 = vor.u32 %v3468_v12, %v2591_v11  ;;  %v3056_v56 = vor.u32 %v3584_v50, %v3055_v48  ;;  %v3580_v62 = vld [vmem:[#allocation6 + $0x5b4] sm:$0xf0]  ;;  %v2895_v6 = vld [vmem:[#allocation6 + $0x488] sm:$0xf]  ;;  %v2385_v14 = vld [vmem:[#allocation6 + $0x98] sm:$0xf0] }
  0x85   :  { %1441 = vmatpush.bf16.msrb.mxu0 %v2400_v27  ;;  %v2703_v27 = vld [vmem:[#allocation6 + $0x308] sm:$0xf]  ;;  %v3040_v4 = vor.u32 %v3580_v62, %v3039_v60  ;;  %v3576_v12 = vld [vmem:[#allocation6 + $0x594] sm:$0xf0]  ;;  %v3398_v0 = vld [vmem:[#allocation6 + $0xc] sm:$0xf] }
  0x86   :  { %1454 = vmatpush.bf16.msrb.mxu1 %v2528_v28  ;;  %v3496_v28 = vld [vmem:[#allocation6 + $0x314] sm:$0xf0]  ;;  %v3023_v8 = vld [vmem:[#allocation6 + $0x588] sm:$0xf] }
  0x87   :  { %1467 = vmatpush.bf16.msrb.mxu2 %v2656_v29  ;;  %v2943_v29 = vld [vmem:[#allocation6 + $0x4e8] sm:$0xf]  ;;  %v3540_v22 = vld [vmem:[#allocation6 + $0x474] sm:$0xf0] }
  0x88   :  { %1480 = vmatpush.bf16.msrb.mxu3 %v2784_v34  ;;  %v3588_v34 = vld [vmem:[#allocation6 + $0x5f4] sm:$0xf0]  ;;  %v2879_v21 = vld [vmem:[#allocation6 + $0x468] sm:$0xf] }
  0x89   :  { %1442 = vmatpush.bf16.msrb.mxu0 %v2384_v41  ;;  %v2561_v41 = vld [vmem:[#allocation6 + $0x1f8] sm:$0xf0]  ;;  %v3072_v44 = vor.u32 %v3588_v34, %v3071_v31  ;;  %v3007_v23 = vld [vmem:[#allocation6 + $0x568] sm:$0xf]  ;;  %v3572_v25 = vld [vmem:[#allocation6 + $0x574] sm:$0xf0]  ;;  %v2880_v31 = vor.u32 %v3540_v22, %v2879_v21 }
  0x8a   :  { %1455 = vmatpush.bf16.msrb.mxu1 %v2512_v42  ;;  %v2704_v42 = vor.u32 %v3496_v28, %v2703_v27  ;;  %v2564_v49 = vor.u32 %v3458_v40, %v2561_v41  ;;  %v3410_v27 = vld [vmem:[#allocation6 + $0x6c] sm:$0xf]  ;;  %v2369_v28 = vld [vmem:[#allocation6 + $0x78] sm:$0xf0]  ;;  %v2863_v35 = vld [vmem:[#allocation6 + $0x448] sm:$0xf] }
  0x8b   :  { %1468 = vmatpush.bf16.msrb.mxu2 %v2640_v43  ;;  %v2944_v43 = vor.u32 %v3556_v30, %v2943_v29  ;;  %v3442_v29 = vld [vmem:[#allocation6 + $0x16c] sm:$0xf]  ;;  %v2497_v30 = vld [vmem:[#allocation6 + $0x178] sm:$0xf0]  ;;  %v2372_v34 = vor.u32 %v3410_v27, %v2369_v28  ;;  %v3536_v37 = vld [vmem:[#allocation6 + $0x454] sm:$0xf0] }
  0x8c   :  { %1481 = vmatpush.bf16.msrb.mxu3 %v2768_v47  ;;  %v3552_v47 = vld [vmem:[#allocation6 + $0x4d4] sm:$0xf0]  ;;  %v3406_v41 = vld [vmem:[#allocation6 + $0x4c] sm:$0xf]  ;;  %v2847_v48 = vld [vmem:[#allocation6 + $0x428] sm:$0xf] }
  0x8d   :  { %1443 = vmatpush.bf16.msrb.mxu0 %v2368_v53  ;;  %v3454_v53 = vld [vmem:[#allocation6 + $0x1cc] sm:$0xf]  ;;  %v3568_v40 = vld [vmem:[#allocation6 + $0x554] sm:$0xf0]  ;;  %v2975_v50 = vld [vmem:[#allocation6 + $0x528] sm:$0xf] }
  0x8e   :  { %1456 = vmatpush.bf16.msrb.mxu1 %v2496_v54  ;;  %v2545_v54 = vld [vmem:[#allocation6 + $0x1d8] sm:$0xf0]  ;;  %v3564_v52 = vld [vmem:[#allocation6 + $0x534] sm:$0xf0]  ;;  %v2959_v62 = vld [vmem:[#allocation6 + $0x508] sm:$0xf] }
  0x8f   :  { %1469 = vmatpush.bf16.msrb.mxu2 %v2624_v55  ;;  %v2928_v55 = vor.u32 %v3552_v47, %v2927_v46  ;;  %v2548_v61 = vor.u32 %v3454_v53, %v2545_v54  ;;  %v3402_v53 = vld [vmem:[#allocation6 + $0x2c] sm:$0xf]  ;;  %v2337_v54 = vld [vmem:[#allocation6 + $0x38] sm:$0xf0]  ;;  %v2976_v60 = vor.u32 %v3564_v52, %v2975_v50  ;;  %v3560_v63 = vld [vmem:[#allocation6 + $0x514] sm:$0xf0] }
  0x90   :  { %1482 = vmatpush.bf16.msrb.mxu3 %v2752_v59  ;;  %v3548_v59 = vld [vmem:[#allocation6 + $0x4b4] sm:$0xf0]  ;;  %v2801_v28 = vld [vmem:[#allocation6 + $0x3d8] sm:$0xf0]  ;;  %v3478_v50 = vld [vmem:[#allocation6 + $0x28c] sm:$0xf] }
  0x91   :  { %1444 = vmatpush.bf16.msrb.mxu0 %v2352_v1  ;;  %v3450_v1 = vld [vmem:[#allocation6 + $0x1ac] sm:$0xf] }
  0x92   :  { %1457 = vmatpush.bf16.msrb.mxu1 %v2480_v2  ;;  %v2529_v2 = vld [vmem:[#allocation6 + $0x1b8] sm:$0xf0]  ;;  %v3510_v52 = vld [vmem:[#allocation6 + $0x38c] sm:$0xf] }
  0x93   :  { %1470 = vmatpush.bf16.msrb.mxu2 %v2608_v3  ;;  %v2912_v3 = vor.u32 %v3548_v59, %v2911_v58  ;;  %v2532_v11 = vor.u32 %v3450_v1, %v2529_v2  ;;  %v2831_v58 = vld [vmem:[#allocation6 + $0x408] sm:$0xf]  ;;  %v3528_v59 = vld [vmem:[#allocation6 + $0x414] sm:$0xf0]  ;;  %v2321_v2 = vld [vmem:[#allocation6 + $0x18] sm:$0xf0] }
  0x94   :  { %1483 = vmatpush.bf16.msrb.mxu3 %v2736_v7  ;;  %v3544_v7 = vld [vmem:[#allocation6 + $0x494] sm:$0xf0] }
  0x95   :  { %1445 = vmatpush.bf16.msrb.mxu0 %v2336_v15  ;;  %v3446_v15 = vld [vmem:[#allocation6 + $0x18c] sm:$0xf]  ;;  %v2896_v18 = vor.u32 %v3544_v7, %v2895_v6  ;;  %v2689_v6 = vld [vmem:[#allocation6 + $0x2f8] sm:$0xf0] }
  0x96   :  { %1458 = vmatpush.bf16.msrb.mxu1 %v2464_v19  ;;  %v3024_v19 = vor.u32 %v3576_v12, %v3023_v8  ;;  %v3522_v7 = vld [vmem:[#allocation6 + $0x3ec] sm:$0xf]  ;;  %v2832_v8 = vor.u32 %v3528_v59, %v2831_v58 }
  0x97   :  { %1471 = vmatpush.bf16.msrb.mxu2 %v2592_v20  ;;  %v2388_v20 = vor.u32 %v3414_v13, %v2385_v14  ;;  %v3554_v12 = vld [vmem:[#allocation6 + $0x4ec] sm:$0xf]  ;;  %v2945_v13 = vld [vmem:[#allocation6 + $0x4f8] sm:$0xf0]  ;;  %v2960_v14 = vor.u32 %v3560_v63, %v2959_v62 }
  0x98   :  { %1484 = vmatpush.bf16.msrb.mxu3 %v2720_v24  ;;  %v2516_v24 = vor.u32 %v3446_v15, %v2513_v17  ;;  %v2324_v15 = vor.u32 %v3398_v0, %v2321_v2  ;;  %v3586_v17 = vld [vmem:[#allocation6 + $0x5ec] sm:$0xf]  ;;  %v2948_v22 = vor.u32 %v3554_v12, %v2945_v13  ;;  %v2753_v0 = vld [vmem:[#allocation6 + $0x378] sm:$0xf0] }
  0x99   :  { %1446 = vmatpush.bf16.msrb.mxu0 %v2320_v32  ;;  %v3008_v32 = vor.u32 %v3572_v25, %v3007_v23  ;;  %v3486_v23 = vld [vmem:[#allocation6 + $0x2cc] sm:$0xf]  ;;  %v2881_v2 = vld [vmem:[#allocation6 + $0x478] sm:$0xf0] }
  0x9a   :  { %1459 = vmatpush.bf16.msrb.mxu1 %v2448_v38  ;;  %v2991_v38 = vld [vmem:[#allocation6 + $0x548] sm:$0xf]  ;;  %v3518_v25 = vld [vmem:[#allocation6 + $0x3cc] sm:$0xf]  ;;  %v2609_v12 = vld [vmem:[#allocation6 + $0x258] sm:$0xf0] }
  0x9b   :  { %1472 = vmatpush.bf16.msrb.mxu2 %v2576_v39  ;;  %v2500_v39 = vor.u32 %v3442_v29, %v2497_v30  ;;  %v2992_v46 = vor.u32 %v3568_v40, %v2991_v38  ;;  %v3550_v29 = vld [vmem:[#allocation6 + $0x4cc] sm:$0xf]  ;;  %v2929_v30 = vld [vmem:[#allocation6 + $0x4d8] sm:$0xf0] }
  0x9c   :  { %1485 = vmatpush.bf16.msrb.mxu3 %v2704_v42  ;;  %1447 = vmatmul.bf16.vlgmr.msrb.gmra.mxu0 %v3919_v10  ;;  %v2353_v42 = vld [vmem:[#allocation6 + $0x58] sm:$0xf0]  ;;  %v3482_v38 = vld [vmem:[#allocation6 + $0x2ac] sm:$0xf] }
  0x9d   :  { %1491 = vmatpush.bf16.msra.mxu0 %v2944_v43  ;;  %1460 = vmatmul.bf16.vlgmr.msrb.gmra.mxu1 %v3926_v26  ;;  %v3438_v43 = vld [vmem:[#allocation6 + $0x14c] sm:$0xf]  ;;  %v2356_v47 = vor.u32 %v3406_v41, %v2353_v42  ;;  %v2785_v42 = vld [vmem:[#allocation6 + $0x3b8] sm:$0xf0] }
  0x9e   :  { %1504 = vmatpush.bf16.msra.mxu1 %v3072_v44  ;;  %1473 = vmatmul.bf16.vlgmr.msrb.gmra.mxu2 %v3917_v9  ;;  %v2481_v44 = vld [vmem:[#allocation6 + $0x158] sm:$0xf0]  ;;  %v3514_v40 = vld [vmem:[#allocation6 + $0x3ac] sm:$0xf] }
  0x9f   :  { %1517 = vmatpush.bf16.msra.mxu2 %v2436_v45  ;;  %1486 = vmatmul.bf16.vlgmr.msrb.gmra.mxu3 %v3921_v16  ;;  %v2864_v45 = vor.u32 %v3536_v37, %v2863_v35  ;;  %v2484_v51 = vor.u32 %v3438_v43, %v2481_v44  ;;  %v2804_v35 = vor.u32 %v3518_v25, %v2801_v28  ;;  %v3546_v43 = vld [vmem:[#allocation6 + $0x4ac] sm:$0xf]  ;;  %v2913_v44 = vld [vmem:[#allocation6 + $0x4b8] sm:$0xf0] }
  0xa0   :  { %1530 = vmatpush.bf16.msra.mxu3 %v2564_v49  ;;  %v3532_v49 = vld [vmem:[#allocation6 + $0x434] sm:$0xf0]  ;;  %v2932_v37 = vor.u32 %v3550_v29, %v2929_v30  ;;  %v3506_v62 = vld [vmem:[#allocation6 + $0x36c] sm:$0xf]  ;;  %v2721_v30 = vld [vmem:[#allocation6 + $0x338] sm:$0xf0] }
  0xa1   :  { %1492 = vmatpush.bf16.msra.mxu0 %v2928_v55  ;;  %v3434_v55 = vld [vmem:[#allocation6 + $0x12c] sm:$0xf] }
  0xa2   :  { %1505 = vmatpush.bf16.msra.mxu1 %v3056_v56  ;;  %v2465_v56 = vld [vmem:[#allocation6 + $0x138] sm:$0xf0]  ;;  %v3502_v13 = vld [vmem:[#allocation6 + $0x34c] sm:$0xf] }
  0xa3   :  { %1518 = vmatpush.bf16.msra.mxu2 %v2420_v57  ;;  %v2848_v57 = vor.u32 %v3532_v49, %v2847_v48  ;;  %v2468_v1 = vor.u32 %v3434_v55, %v2465_v56  ;;  %v2788_v48 = vor.u32 %v3514_v40, %v2785_v42  ;;  %v2916_v49 = vor.u32 %v3546_v43, %v2913_v44  ;;  %v3542_v55 = vld [vmem:[#allocation6 + $0x48c] sm:$0xf]  ;;  %v2897_v56 = vld [vmem:[#allocation6 + $0x498] sm:$0xf0] }
  0xa4   :  { %1531 = vmatpush.bf16.msra.mxu3 %v2548_v61  ;;  %v2340_v61 = vor.u32 %v3402_v53, %v2337_v54  ;;  %v2769_v54 = vld [vmem:[#allocation6 + $0x398] sm:$0xf0]  ;;  %v3466_v25 = vld [vmem:[#allocation6 + $0x22c] sm:$0xf] }
  0xa5   :  { %1493 = vmatpush.bf16.msra.mxu0 %v2912_v3  ;;  %v3430_v3 = vld [vmem:[#allocation6 + $0x10c] sm:$0xf]  ;;  %v2772_v59 = vor.u32 %v3510_v52, %v2769_v54  ;;  %v2577_v44 = vld [vmem:[#allocation6 + $0x218] sm:$0xf0]  ;;  %v3135_v52 = vld [vmem:[#allocation9 + $0x70] sm:$0xf] }
  0xa6   :  { %1506 = vmatpush.bf16.msra.mxu1 %v3040_v4  ;;  %v2449_v4 = vld [vmem:[#allocation6 + $0x118] sm:$0xf0]  ;;  %v3498_v28 = vld [vmem:[#allocation6 + $0x32c] sm:$0xf] }
  0xa7   :  { %1519 = vmatpush.bf16.msra.mxu2 %v2404_v5  ;;  %v3490_v5 = vld [vmem:[#allocation6 + $0x2ec] sm:$0xf]  ;;  %v2724_v42 = vor.u32 %v3498_v28, %v2721_v30  ;;  %v3612_v28 = vld [vmem:[#allocation9 + $0xb4] sm:$0xf0]  ;;  %v3095_v30 = vld [vmem:[#allocation9 + $0x20] sm:$0xf] }
  0xa8   :  { %1532 = vmatpush.bf16.msra.mxu3 %v2532_v11  ;;  %v2817_v11 = vld [vmem:[#allocation6 + $0x3f8] sm:$0xf0]  ;;  %v3462_v40 = vld [vmem:[#allocation6 + $0x20c] sm:$0xf] }
  0xa9   :  { %1494 = vmatpush.bf16.msra.mxu0 %v2896_v18  ;;  %v3073_v18 = vld [vmem:[#allocation6 + $0x5f8] sm:$0xf0]  ;;  %v2820_v21 = vor.u32 %v3522_v7, %v2817_v11  ;;  %v2756_v7 = vor.u32 %v3506_v62, %v2753_v0  ;;  %v3470_v11 = vld [vmem:[#allocation6 + $0x24c] sm:$0xf]  ;;  %v2580_v54 = vor.u32 %v3462_v40, %v2577_v44  ;;  %v3087_v44 = vld [vmem:[#allocation9 + $0x10] sm:$0xf] }
  0xaa   :  { %1507 = vmatpush.bf16.msra.mxu1 %v3024_v19  ;;  %v2452_v19 = vor.u32 %v3430_v3, %v2449_v4  ;;  %v3076_v27 = vor.u32 %v3586_v17, %v3073_v18  ;;  %v3570_v3 = vld [vmem:[#allocation6 + $0x56c] sm:$0xf]  ;;  %v3009_v4 = vld [vmem:[#allocation6 + $0x578] sm:$0xf0] }
  0xab   :  { %1520 = vmatpush.bf16.msra.mxu2 %v2388_v20  ;;  %v2692_v20 = vor.u32 %v3490_v5, %v2689_v6  ;;  %v3534_v17 = vld [vmem:[#allocation6 + $0x44c] sm:$0xf]  ;;  %v2865_v18 = vld [vmem:[#allocation6 + $0x458] sm:$0xf0] }
  0xac   :  { %1533 = vmatpush.bf16.msra.mxu3 %v2516_v24  ;;  %v2673_v24 = vld [vmem:[#allocation6 + $0x2d8] sm:$0xf0]  ;;  %v3602_v0 = vld [vmem:[#allocation9 + $0x64] sm:$0xf0] }
  0xad   :  { %1495 = vmatpush.bf16.msra.mxu0 %v2880_v31  ;;  %v3582_v31 = vld [vmem:[#allocation6 + $0x5cc] sm:$0xf] }
  0xae   :  { %1508 = vmatpush.bf16.msra.mxu1 %v3008_v32  ;;  %v3057_v32 = vld [vmem:[#allocation6 + $0x5d8] sm:$0xf0] }
  0xaf   :  { %1521 = vmatpush.bf16.msra.mxu2 %v2372_v34  ;;  %v2676_v34 = vor.u32 %v3486_v23, %v2673_v24  ;;  %v3060_v41 = vor.u32 %v3582_v31, %v3057_v32  ;;  %v2868_v24 = vor.u32 %v3534_v17, %v2865_v18  ;;  %v3530_v31 = vld [vmem:[#allocation6 + $0x42c] sm:$0xf]  ;;  %v2849_v32 = vld [vmem:[#allocation6 + $0x438] sm:$0xf0]  ;;  %v3111_v18 = vld [vmem:[#allocation9 + $0x40] sm:$0xf] }
  0xb0   :  { %1534 = vmatpush.bf16.msra.mxu3 %v2500_v39  ;;  %v2657_v39 = vld [vmem:[#allocation6 + $0x2b8] sm:$0xf0]  ;;  %v2852_v43 = vor.u32 %v3530_v31, %v2849_v32  ;;  %v3594_v31 = vld [vmem:[#allocation9 + $0x24] sm:$0xf0] }
  0xb1   :  { %1496 = vmatpush.bf16.msra.mxu0 %v2864_v45  ;;  %v3578_v45 = vld [vmem:[#allocation6 + $0x5ac] sm:$0xf] }
  0xb2   :  { %1509 = vmatpush.bf16.msra.mxu1 %v2992_v46  ;;  %v3041_v46 = vld [vmem:[#allocation6 + $0x5b8] sm:$0xf0] }
  0xb3   :  { %1522 = vmatpush.bf16.msra.mxu2 %v2356_v47  ;;  %v2660_v47 = vor.u32 %v3482_v38, %v2657_v39  ;;  %v3044_v53 = vor.u32 %v3578_v45, %v3041_v46  ;;  %v3494_v45 = vld [vmem:[#allocation6 + $0x30c] sm:$0xf]  ;;  %v2705_v46 = vld [vmem:[#allocation6 + $0x318] sm:$0xf0] }
  0xb4   :  { %1535 = vmatpush.bf16.msra.mxu3 %v2484_v51  ;;  %v2641_v51 = vld [vmem:[#allocation6 + $0x298] sm:$0xf0] }
  0xb5   :  { %1497 = vmatpush.bf16.msra.mxu0 %v2848_v57  ;;  %v3574_v57 = vld [vmem:[#allocation6 + $0x58c] sm:$0xf]  ;;  %v2644_v58 = vor.u32 %v3478_v50, %v2641_v51  ;;  %v2961_v51 = vld [vmem:[#allocation6 + $0x518] sm:$0xf0] }
  0xb6   :  { %1510 = vmatpush.bf16.msra.mxu1 %v2976_v60  ;;  %v3474_v60 = vld [vmem:[#allocation6 + $0x26c] sm:$0xf] }
  0xb7   :  { %1523 = vmatpush.bf16.msra.mxu2 %v2340_v61  ;;  %v2625_v61 = vld [vmem:[#allocation6 + $0x278] sm:$0xf0]  ;;  %v3558_v50 = vld [vmem:[#allocation6 + $0x50c] sm:$0xf] }
  0xb8   :  { %1536 = vmatpush.bf16.msra.mxu3 %v2468_v1  ;;  %v3538_v1 = vld [vmem:[#allocation6 + $0x46c] sm:$0xf]  ;;  %v2628_v5 = vor.u32 %v3474_v60, %v2625_v61 }
  0xb9   :  { %1498 = vmatpush.bf16.msra.mxu0 %v2832_v8  ;;  %v2884_v8 = vor.u32 %v3538_v1, %v2881_v2 }
  0xba   :  { %1511 = vmatpush.bf16.msra.mxu1 %v2960_v14  ;;  %v3012_v14 = vor.u32 %v3570_v3, %v3009_v4  ;;  %v3191_v3 = vld [vmem:[#allocation9 + $0xe0] sm:$0xf]  ;;  %v3618_v4 = vld [vmem:[#allocation9 + $0xe4] sm:$0xf0] }
  0xbb   :  { %1524 = vmatpush.bf16.msra.mxu2 %v2324_v15  ;;  %v2737_v15 = vld [vmem:[#allocation6 + $0x358] sm:$0xf0] }
  0xbc   :  { %1537 = vmatpush.bf16.msra.mxu3 %v2452_v19  ;;  %1499 = vmatmul.bf16.vlgmr.msra.gmra.mxu0 %v3929_v33  ;;  %v3566_v19 = vld [vmem:[#allocation6 + $0x54c] sm:$0xf]  ;;  %v2740_v23 = vor.u32 %v3502_v13, %v2737_v15  ;;  %v3183_v13 = vld [vmem:[#allocation9 + $0xd0] sm:$0xf] }
  0xbd   :  { %1543 = vmatpush.bf16.msrb.mxu0 %v2692_v20  ;;  %1512 = vmatmul.bf16.vlgmr.msra.gmra.mxu1 %v3931_v36  ;;  %v2993_v20 = vld [vmem:[#allocation6 + $0x558] sm:$0xf0] }
  0xbe   :  { %1556 = vmatpush.bf16.msrb.mxu1 %v2820_v21  ;;  %1525 = vmatmul.bf16.vlgmr.msra.gmra.mxu2 %v3919_v10  ;;  %v3025_v10 = vld [vmem:[#allocation6 + $0x598] sm:$0xf0]  ;;  %v2612_v21 = vor.u32 %v3470_v11, %v2609_v12  ;;  %v2996_v29 = vor.u32 %v3566_v19, %v2993_v20  ;;  %v3192_v12 = vor.u32 %v3618_v4, %v3191_v3  ;;  %v3175_v19 = vld [vmem:[#allocation9 + $0xc0] sm:$0xf]  ;;  %v3614_v20 = vld [vmem:[#allocation9 + $0xc4] sm:$0xf0] }
  0xbf   :  { %1569 = vmatpush.bf16.msrb.mxu2 %v2948_v22  ;;  %1538 = vmatmul.bf16.vlgmr.msra.gmra.mxu3 %v3926_v26  ;;  %v2900_v26 = vor.u32 %v3542_v55, %v2897_v56  ;;  %v3028_v63 = vor.u32 %v3574_v57, %v3025_v10  ;;  %v3951_v22 = vpop.f32.mrf.mxu1  ;;  %v3957_v55 = vld [vmem:[#allocation8] sm:$0xf]  ;;  %v3199_v56 = vld [vmem:[#allocation9 + $0xf0] sm:$0xf]  ;;  %v3620_v57 = vld [vmem:[#allocation9 + $0xf4] sm:$0xf0] }
  0xc0   :  { %1582 = vmatpush.bf16.msrb.mxu3 %v3076_v27  ;;  %v3949_v6 = vpop.f32.mrf.mxu0  ;;  %v2593_v27 = vld [vmem:[#allocation6 + $0x238] sm:$0xf0]  ;;  %v315_v62 = vperm.slane %v3957_v55, 0  ;;  %v3200_v1 = vor.u32 %v3620_v57, %v3199_v56  ;;  %v3143_v57 = vld [vmem:[#allocation9 + $0x80] sm:$0xf]  ;;  %v316_v3 = vperm.slane %v3957_v55, 1 }
  0xc1   :  { %1544 = vmatpush.bf16.msrb.mxu0 %v2676_v34  ;;  %v2596_v39 = vor.u32 %v3466_v25, %v2593_v27  ;;  %v3600_v11 = vld [vmem:[#allocation9 + $0x54] sm:$0xf0]  ;;  %v3167_v27 = vld [vmem:[#allocation9 + $0xb0] sm:$0xf]  ;;  %v3617_v4 = vld [vmem:[#allocation9 + $0xe4] sm:$0xf] }
  0xc2   :  { %1557 = vmatpush.bf16.msrb.mxu1 %v2804_v35  ;;  %v3562_v35 = vld [vmem:[#allocation6 + $0x52c] sm:$0xf]  ;;  %v3955_v38 = vpop.f32.mrf.mxu3  ;;  %v3596_v25 = vld [vmem:[#allocation9 + $0x34] sm:$0xf0]  ;;  %v3168_v32 = vor.u32 %v3612_v28, %v3167_v27  ;;  %v3613_v28 = vld [vmem:[#allocation9 + $0xc4] sm:$0xf] }
  0xc3   :  { %1570 = vmatpush.bf16.msrb.mxu2 %v2932_v37  ;;  %v2977_v37 = vld [vmem:[#allocation6 + $0x538] sm:$0xf0] }
  0xc4   :  { %1583 = vmatpush.bf16.msrb.mxu3 %v3060_v41 }
  0xc5   :  { %1545 = vmatpush.bf16.msrb.mxu0 %v2660_v47  ;;  %v2980_v47 = vor.u32 %v3562_v35, %v2977_v37  ;;  %v3159_v37 = vld [vmem:[#allocation9 + $0xa0] sm:$0xf] }
  0xc6   :  { %1558 = vmatpush.bf16.msrb.mxu1 %v2788_v48  ;;  %v3526_v48 = vld [vmem:[#allocation6 + $0x40c] sm:$0xf] }
  0xc7   :  { %1571 = vmatpush.bf16.msrb.mxu2 %v2916_v49  ;;  %v3953_v34 = vpop.f32.mrf.mxu2  ;;  %v2833_v49 = vld [vmem:[#allocation6 + $0x418] sm:$0xf0]  ;;  %v1307_v10 = vpop.f32.mrf.mxu1 }
  0xc8   :  { %1584 = vmatpush.bf16.msrb.mxu3 %v3044_v53  ;;  %v1294_v41 = vpop.f32.mrf.mxu0  ;;  %v3604_v53 = vld [vmem:[#allocation9 + $0x74] sm:$0xf0]  ;;  %v3606_v10 = vld [vmem:[#allocation9 + $0x84] sm:$0xf0] }
  0xc9   :  { %1546 = vmatpush.bf16.msrb.mxu0 %v2644_v58  ;;  %v2708_v58 = vor.u32 %v3494_v45, %v2705_v46  ;;  %v3136_v60 = vor.u32 %v3604_v53, %v3135_v52  ;;  %v3096_v41 = vor.u32 %v3594_v31, %v3095_v30  ;;  %v3592_v45 = vld [vmem:[#allocation9 + $0x14] sm:$0xf0]  ;;  %v3603_v52 = vld [vmem:[#allocation9 + $0x74] sm:$0xf]  ;;  %v3239_v30 = vld [vmem:[#allocation9 + $0x140] sm:$0xf] }
  0xca   :  { %1559 = vmatpush.bf16.msrb.mxu1 %v2772_v59  ;;  %v2836_v59 = vor.u32 %v3526_v48, %v2833_v49  ;;  %v1333_v2 = vpop.f32.mrf.mxu3  ;;  %v3088_v48 = vor.u32 %v3592_v45, %v3087_v44  ;;  %v3630_v31 = vld [vmem:[#allocation9 + $0x144] sm:$0xf0]  ;;  %v3169_v44 = vld [vmem:[#allocation9 + $0xb8] sm:$0xf0] }
  0xcb   :  { %1572 = vmatpush.bf16.msrb.mxu2 %v2900_v26  ;;  %v2964_v26 = vor.u32 %v3558_v50, %v2961_v51  ;;  %v3079_v50 = vld [vmem:[#allocation9] sm:$0xf]  ;;  %v3590_v51 = vld [vmem:[#allocation9 + $0x4] sm:$0xf0]  ;;  %v3240_v45 = vor.u32 %v3630_v31, %v3239_v30  ;;  %v3652_v30 = vld [vmem:[#allocation9 + $0x1f4] sm:$0xf0] }
  0xcc   :  { %1585 = vmatpush.bf16.msrb.mxu3 %v3028_v63  ;;  %v3127_v63 = vld [vmem:[#allocation9 + $0x60] sm:$0xf] }
  0xcd   :  { %1547 = vmatpush.bf16.msrb.mxu0 %v2628_v5  ;;  %v3128_v5 = vor.u32 %v3602_v0, %v3127_v63  ;;  %v3144_v63 = vor.u32 %v3606_v10, %v3143_v57  ;;  %v3601_v0 = vld [vmem:[#allocation9 + $0x64] sm:$0xf]  ;;  %v3223_v10 = vld [vmem:[#allocation9 + $0x120] sm:$0xf] }
  0xce   :  { %1560 = vmatpush.bf16.msrb.mxu1 %v2756_v7  ;;  %v1293_v7 = vadd.f32 %v3949_v6, %v315_v62 }
  0xcf   :  { %1573 = vmatpush.bf16.msrb.mxu2 %v2884_v8  ;;  %v1320_v61 = vpop.f32.mrf.mxu2  ;;  %v3119_v8 = vld [vmem:[#allocation9 + $0x50] sm:$0xf] }
  0xd0   :  { %1586 = vmatpush.bf16.msrb.mxu3 %v3012_v14  ;;  %v3616_v14 = vld [vmem:[#allocation9 + $0xd4] sm:$0xf0]  ;;  %v3120_v15 = vor.u32 %v3600_v11, %v3119_v8  ;;  %v1306_v17 = vadd.f32 %v3951_v22, %v1293_v7  ;;  %v3263_v7 = vld [vmem:[#allocation9 + $0x170] sm:$0xf] }
  0xd1   :  { %1548 = vmatpush.bf16.msrb.mxu0 %v2612_v21  ;;  %v3184_v6 = vor.u32 %v3616_v14, %v3183_v13  ;;  %v3636_v8 = vld [vmem:[#allocation9 + $0x174] sm:$0xf0]  ;;  %v3255_v14 = vld [vmem:[#allocation9 + $0x160] sm:$0xf] }
  0xd2   :  { %1561 = vmatpush.bf16.msrb.mxu1 %v2740_v23  ;;  %v3264_v13 = vor.u32 %v3636_v8, %v3263_v7  ;;  %v3624_v7 = vld [vmem:[#allocation9 + $0x114] sm:$0xf0] }
  0xd3   :  { %1574 = vmatpush.bf16.msrb.mxu2 %v2868_v24  ;;  %v3103_v24 = vld [vmem:[#allocation9 + $0x30] sm:$0xf] }
  0xd4   :  { %1587 = vmatpush.bf16.msrb.mxu3 %v2996_v29  ;;  %v3104_v22 = vor.u32 %v3596_v25, %v3103_v24  ;;  %v3597_v24 = vld [vmem:[#allocation9 + $0x44] sm:$0xf]  ;;  %v3113_v25 = vld [vmem:[#allocation9 + $0x48] sm:$0xf0] }
  0xd5   :  { %1549 = vmatpush.bf16.msrb.mxu0 %v2596_v39  ;;  %v3610_v39 = vld [vmem:[#allocation9 + $0xa4] sm:$0xf0] }
  0xd6   :  { %1562 = vmatpush.bf16.msrb.mxu1 %v2724_v42  ;;  %v3160_v46 = vor.u32 %v3610_v39, %v3159_v37  ;;  %v3595_v37 = vld [vmem:[#allocation9 + $0x34] sm:$0xf]  ;;  %v3105_v39 = vld [vmem:[#allocation9 + $0x38] sm:$0xf0] }
  0xd7   :  { %1575 = vmatpush.bf16.msrb.mxu2 %v2852_v43 }
  0xd8   :  { %1588 = vmatpush.bf16.msrb.mxu3 %v2980_v47  ;;  %v3151_v47 = vld [vmem:[#allocation9 + $0x90] sm:$0xf] }
  0xd9   :  { %1550 = vmatpush.bf16.msrb.mxu0 %v2580_v54  ;;  %v1344_v21 = vpop.f32.mrf.mxu0  ;;  %v3137_v54 = vld [vmem:[#allocation9 + $0x78] sm:$0xf0] }
  0xda   :  { %1563 = vmatpush.bf16.msrb.mxu1 %v2708_v58  ;;  %v3140_v62 = vor.u32 %v3603_v52, %v3137_v54  ;;  %v3609_v52 = vld [vmem:[#allocation9 + $0xa4] sm:$0xf] }
  0xdb   :  { %1576 = vmatpush.bf16.msrb.mxu2 %v2836_v59  ;;  %v3619_v59 = vld [vmem:[#allocation9 + $0xf4] sm:$0xf] }
  0xdc   :  { %1589 = vmatpush.bf16.msrb.mxu3 %v2964_v26  ;;  %1551 = vmatmul.bf16.vlgmr.msrb.gmra.mxu0 %v3917_v9  ;;  %v3598_v9 = vld [vmem:[#allocation9 + $0x44] sm:$0xf0]  ;;  %v3201_v26 = vld [vmem:[#allocation9 + $0xf8] sm:$0xf0] }
  0xdd   :  { %1993 = vmatpush.bf16.msra.mxu0 %v3136_v60  ;;  %1564 = vmatmul.bf16.vlgmr.msrb.gmra.mxu1 %v3921_v16  ;;  %v3112_v23 = vor.u32 %v3598_v9, %v3111_v18  ;;  %v1357_v16 = vpop.f32.mrf.mxu1  ;;  %v3080_v60 = vor.u32 %v3590_v51, %v3079_v50  ;;  %v3204_v2 = vor.u32 %v3619_v59, %v3201_v26  ;;  %v3121_v18 = vld [vmem:[#allocation9 + $0x58] sm:$0xf0] }
  0xde   :  { %2006 = vmatpush.bf16.msra.mxu1 %v3200_v1  ;;  %1577 = vmatmul.bf16.vlgmr.msrb.gmra.mxu2 %v3929_v33  ;;  %v1319_v33 = vadd.f32 %v3953_v34, %v1306_v17  ;;  %v3129_v1 = vld [vmem:[#allocation9 + $0x68] sm:$0xf0]  ;;  %v3599_v17 = vld [vmem:[#allocation9 + $0x54] sm:$0xf] }
  0xdf   :  { %1590 = vmatmul.bf16.vlgmr.msrb.gmra.mxu3 %v3931_v36  ;;  %v3176_v36 = vor.u32 %v3614_v20, %v3175_v19  ;;  %v3615_v19 = vld [vmem:[#allocation9 + $0xd4] sm:$0xf]  ;;  %v3185_v20 = vld [vmem:[#allocation9 + $0xd8] sm:$0xf0]  ;;  %2019 = vmatpush.bf16.msra.mxu2 %v3264_v13  ;;  %v3589_v13 = vld [vmem:[#allocation9 + $0x4] sm:$0xf] }
  0xe0   :  { %v1332_v29 = vadd.f32 %v3955_v38, %v1319_v33  ;;  %v3608_v38 = vld [vmem:[#allocation9 + $0x94] sm:$0xf0]  ;;  %v3124_v33 = vor.u32 %v3599_v17, %v3121_v18  ;;  %v3605_v17 = vld [vmem:[#allocation9 + $0x84] sm:$0xf]  ;;  %v3145_v18 = vld [vmem:[#allocation9 + $0x88] sm:$0xf0] }
  0xe1   :  { %1994 = vmatpush.bf16.msra.mxu0 %v3128_v5  ;;  %v1370_v35 = vpop.f32.mrf.mxu2  ;;  %v1346_v34 = vpop.f32.mrf.mxu0  ;;  %v3152_v53 = vor.u32 %v3608_v38, %v3151_v47  ;;  %v3193_v5 = vld [vmem:[#allocation9 + $0xe8] sm:$0xf0]  ;;  %v3108_v38 = vor.u32 %v3595_v37, %v3105_v39 }
  0xe2   :  { %2007 = vmatpush.bf16.msra.mxu1 %v3192_v12  ;;  %v3968_v40 = vpop.f32.mrf.mxu3  ;;  %v1345_v43 = vadd.f32 %v1344_v21, %v1332_v29  ;;  %v3132_v12 = vor.u32 %v3601_v0, %v3129_v1  ;;  %v3196_v9 = vor.u32 %v3617_v4, %v3193_v5  ;;  %v3607_v0 = vld [vmem:[#allocation9 + $0x94] sm:$0xf]  ;;  %v3153_v1 = vld [vmem:[#allocation9 + $0x98] sm:$0xf0]  ;;  %v3215_v5 = vld [vmem:[#allocation9 + $0x110] sm:$0xf] }
  0xe4   :  { %v1358_v49 = vadd.f32 %v1357_v16, %v1345_v43  ;;  %v3632_v16 = vld [vmem:[#allocation9 + $0x154] sm:$0xf0]  ;;  %v3611_v43 = vld [vmem:[#allocation9 + $0xb4] sm:$0xf] }
  0xe5   :  { %1995 = vmatpush.bf16.msra.mxu0 %v3120_v15  ;;  %v1359_v42 = vpop.f32.mrf.mxu1  ;;  %v3634_v15 = vld [vmem:[#allocation9 + $0x164] sm:$0xf0]  ;;  %v3172_v50 = vor.u32 %v3611_v43, %v3169_v44  ;;  %v3629_v44 = vld [vmem:[#allocation9 + $0x144] sm:$0xf] }
  0xe6   :  { %2008 = vmatpush.bf16.msra.mxu1 %v3184_v6  ;;  %v1595_v61 = vmax.f32 %v1358_v49, 0.0  ;;  %v1371_v6 = vadd.f32 %v1370_v35, %v316_v3  ;;  %v3256_v21 = vor.u32 %v3634_v15, %v3255_v14  ;;  %v3097_v49 = vld [vmem:[#allocation9 + $0x28] sm:$0xf0]  ;;  %v3156_v15 = vor.u32 %v3607_v0, %v3153_v1  ;;  %v3287_v1 = vld [vmem:[#allocation9 + $0x1a0] sm:$0xf] }
  0xe7   :  { %v3081_v14 = vld [vmem:[#allocation9 + $0x8] sm:$0xf0] }
  0xe8   :  { %v3971_v11 = vpack.c.bf16 %v1595_v61, %v1595_v61  ;;  %v1384_v27 = vadd.f32 %v3968_v40, %v1371_v6  ;;  %2020 = vmatpush.bf16.msra.mxu2 %v3256_v21  ;;  %v3231_v40 = vld [vmem:[#allocation9 + $0x130] sm:$0xf]  ;;  %v3089_v61 = vld [vmem:[#allocation9 + $0x18] sm:$0xf0]  ;;  %v3216_v6 = vor.u32 %v3624_v7, %v3215_v5  ;;  %v3622_v21 = vld [vmem:[#allocation9 + $0x104] sm:$0xf0] }
  0xe9   :  { %1996 = vmatpush.bf16.msra.mxu0 %v3112_v23  ;;  %v1372_v56 = vpop.f32.mrf.mxu2  ;;  %v3247_v23 = vld [vmem:[#allocation9 + $0x150] sm:$0xf]  ;;  %v3621_v7 = vld [vmem:[#allocation9 + $0x104] sm:$0xf] }
  0xea   :  { %2009 = vmatpush.bf16.msra.mxu1 %v3176_v36  ;;  %v1385_v58 = vpop.f32.mrf.mxu3  ;;  %v3188_v36 = vor.u32 %v3615_v19, %v3185_v20  ;;  %v3248_v29 = vor.u32 %v3632_v16, %v3247_v23  ;;  %v3207_v20 = vld [vmem:[#allocation9 + $0x100] sm:$0xf]  ;;  %v3084_v23 = vor.u32 %v3589_v13, %v3081_v14  ;;  %v3635_v16 = vld [vmem:[#allocation9 + $0x174] sm:$0xf]  ;;  %v3279_v14 = vld [vmem:[#allocation9 + $0x190] sm:$0xf] }
  0xeb   :  { %v3626_v58 = vld [vmem:[#allocation9 + $0x124] sm:$0xf0] }
  0xec   :  { %2021 = vmatpush.bf16.msra.mxu2 %v3248_v29  ;;  %v3224_v3 = vor.u32 %v3626_v58, %v3223_v10  ;;  %v3327_v29 = vld [vmem:[#allocation9 + $0x1f0] sm:$0xf]  ;;  %v3225_v58 = vld [vmem:[#allocation9 + $0x128] sm:$0xf0] }
  0xed   :  { %1997 = vmatpush.bf16.msra.mxu0 %v3104_v22  ;;  %v3177_v22 = vld [vmem:[#allocation9 + $0xc8] sm:$0xf0]  ;;  %v3328_v31 = vor.u32 %v3652_v30, %v3327_v29 }
  0xee   :  { %2010 = vmatpush.bf16.msra.mxu1 %v3168_v32  ;;  %v3116_v32 = vor.u32 %v3597_v24, %v3113_v25  ;;  %v3180_v34 = vor.u32 %v3613_v28, %v3177_v22  ;;  %v3148_v24 = vor.u32 %v3605_v17, %v3145_v18  ;;  %v3208_v25 = vor.u32 %v3622_v21, %v3207_v20  ;;  %v3257_v28 = vld [vmem:[#allocation9 + $0x168] sm:$0xf0]  ;;  %v3638_v20 = vld [vmem:[#allocation9 + $0x184] sm:$0xf0] }
  0xef   :  { %2032 = vmatpush.bf16.msra.mxu3 %v3328_v31  ;;  %v3647_v31 = vld [vmem:[#allocation9 + $0x1d4] sm:$0xf] }
  0xf0   :  { %2022 = vmatpush.bf16.msra.mxu2 %v3240_v45  ;;  %v3241_v45 = vld [vmem:[#allocation9 + $0x148] sm:$0xf0] }
  0xf1   :  { %1998 = vmatpush.bf16.msra.mxu0 %v3096_v41 }
  0xf2   :  { %2011 = vmatpush.bf16.msra.mxu1 %v3160_v46  ;;  %v3628_v46 = vld [vmem:[#allocation9 + $0x134] sm:$0xf0] }
  0xf3   :  { %v3232_v54 = vor.u32 %v3628_v46, %v3231_v40  ;;  %v3311_v40 = vld [vmem:[#allocation9 + $0x1d0] sm:$0xf]  ;;  %v3648_v46 = vld [vmem:[#allocation9 + $0x1d4] sm:$0xf0] }
  0xf5   :  { %1999 = vmatpush.bf16.msra.mxu0 %v3088_v48  ;;  %v3593_v48 = vld [vmem:[#allocation9 + $0x24] sm:$0xf]  ;;  %2023 = vmatpush.bf16.msra.mxu2 %v3232_v54  ;;  %v3646_v54 = vld [vmem:[#allocation9 + $0x1c4] sm:$0xf0] }
  0xf6   :  { %2012 = vmatpush.bf16.msra.mxu1 %v3152_v53  ;;  %v3161_v53 = vld [vmem:[#allocation9 + $0xa8] sm:$0xf0]  ;;  %v3100_v59 = vor.u32 %v3593_v48, %v3097_v49  ;;  %v3627_v48 = vld [vmem:[#allocation9 + $0x134] sm:$0xf]  ;;  %v3233_v49 = vld [vmem:[#allocation9 + $0x138] sm:$0xf0] }
  0xf9   :  { %2000 = vmatpush.bf16.msra.mxu0 %v3080_v60  ;;  %v1396_v35 = vpop.f32.mrf.mxu0  ;;  %v3591_v60 = vld [vmem:[#allocation9 + $0x14] sm:$0xf]  ;;  %2024 = vmatpush.bf16.msra.mxu2 %v3224_v3 }
  0xfa   :  { %2013 = vmatpush.bf16.msra.mxu1 %v3144_v63  ;;  %v1397_v41 = vadd.f32 %v1396_v35, %v1384_v27  ;;  %v1409_v42 = vpop.f32.mrf.mxu1  ;;  %v3092_v8 = vor.u32 %v3591_v60, %v3089_v61  ;;  %v3633_v27 = vld [vmem:[#allocation9 + $0x164] sm:$0xf]  ;;  %v3249_v35 = vld [vmem:[#allocation9 + $0x158] sm:$0xf0]  ;;  %v317_v61 = vperm.slane %v3957_v55, 2 }
  0xfb   :  { %v3260_v22 = vor.u32 %v3633_v27, %v3257_v28  ;;  %v3321_v27 = vld [vmem:[#allocation9 + $0x1e8] sm:$0xf0] }
  0xfc   :  { %2001 = vmatmul.bf16.vlgmr.msra.gmra.mxu0 %v3971_v11  ;;  %v1410_v47 = vadd.f32 %v1409_v42, %v1397_v41  ;;  %v3319_v41 = vld [vmem:[#allocation9 + $0x1e0] sm:$0xf]  ;;  %v3650_v42 = vld [vmem:[#allocation9 + $0x1e4] sm:$0xf0] }
  0xfd   :  { %2045 = vmatpush.bf16.msrb.mxu0 %v3140_v62  ;;  %v3164_v62 = vor.u32 %v3609_v52, %v3161_v53  ;;  %2025 = vmatpush.bf16.msra.mxu2 %v3216_v6  ;;  %v3320_v43 = vor.u32 %v3650_v42, %v3319_v41  ;;  %v3236_v52 = vor.u32 %v3627_v48, %v3233_v49  ;;  %v3303_v53 = vld [vmem:[#allocation9 + $0x1c0] sm:$0xf]  ;;  %v3289_v48 = vld [vmem:[#allocation9 + $0x1a8] sm:$0xf0] }
  0xfe   :  { %2058 = vmatpush.bf16.msrb.mxu1 %v3204_v2  ;;  %v3304_v10 = vor.u32 %v3646_v54, %v3303_v53  ;;  %v3281_v53 = vld [vmem:[#allocation9 + $0x198] sm:$0xf0] }
  0xff   :  { %2033 = vmatpush.bf16.msra.mxu3 %v3320_v43  ;;  %v3645_v43 = vld [vmem:[#allocation9 + $0x1c4] sm:$0xf] }
 0x101   :  { %2046 = vmatpush.bf16.msrb.mxu0 %v3132_v12  ;;  %v1422_v51 = vpop.f32.mrf.mxu2  ;;  %v1398_v63 = vpop.f32.mrf.mxu0  ;;  %2026 = vmatpush.bf16.msra.mxu2 %v3208_v25 }
 0x102   :  { %2059 = vmatpush.bf16.msrb.mxu1 %v3196_v9  ;;  %v1423_v56 = vadd.f32 %v1422_v51, %v1410_v47  ;;  %v1435_v57 = vpop.f32.mrf.mxu3  ;;  %v1411_v2 = vpop.f32.mrf.mxu1  ;;  %v3312_v47 = vor.u32 %v3648_v46, %v3311_v40  ;;  %v3217_v63 = vld [vmem:[#allocation9 + $0x118] sm:$0xf0]  ;;  %v3643_v40 = vld [vmem:[#allocation9 + $0x1b4] sm:$0xf] }
 0x103   :  { %v3642_v2 = vld [vmem:[#allocation9 + $0x1a4] sm:$0xf0]  ;;  %v3297_v46 = vld [vmem:[#allocation9 + $0x1b8] sm:$0xf0] }
 0x104   :  { %v1436_v26 = vadd.f32 %v1435_v57, %v1423_v56  ;;  %2034 = vmatpush.bf16.msra.mxu3 %v3312_v47  ;;  %v3625_v56 = vld [vmem:[#allocation9 + $0x124] sm:$0xf]  ;;  %v3288_v13 = vor.u32 %v3642_v2, %v3287_v1  ;;  %v3300_v47 = vor.u32 %v3643_v40, %v3297_v46 }
 0x105   :  { %2047 = vmatpush.bf16.msrb.mxu0 %v3124_v33  ;;  %v3265_v33 = vld [vmem:[#allocation9 + $0x178] sm:$0xf0]  ;;  %v3228_v60 = vor.u32 %v3625_v56, %v3225_v58  ;;  %v3637_v56 = vld [vmem:[#allocation9 + $0x184] sm:$0xf] }
 0x106   :  { %2060 = vmatpush.bf16.msrb.mxu1 %v3188_v36  ;;  %v1596_v4 = vmax.f32 %v1436_v26, 0.0  ;;  %v3268_v36 = vor.u32 %v3635_v16, %v3265_v33  ;;  %v3644_v26 = vld [vmem:[#allocation9 + $0x1b4] sm:$0xf0]  ;;  %v3329_v16 = vld [vmem:[#allocation9 + $0x1f8] sm:$0xf0]  ;;  %v3661_v40 = vld [vmem:[#allocation11 + $0x40] sm:$0xff] }
 0x108   :  { %v1600_v12 = vpack.c.bf16 %v1596_v4, %v1596_v4  ;;  %2071 = vmatpush.bf16.msrb.mxu2 %v3268_v36  ;;  %2035 = vmatpush.bf16.msra.mxu3 %v3304_v10  ;;  %v3649_v36 = vld [vmem:[#allocation9 + $0x1e4] sm:$0xf]  ;;  %v318_v10 = vperm.slane %v3957_v55, 3 }
 0x109   :  { %2048 = vmatpush.bf16.msrb.mxu0 %v3116_v32  ;;  %v1424_v9 = vpop.f32.mrf.mxu2  ;;  %v3631_v32 = vld [vmem:[#allocation9 + $0x154] sm:$0xf]  ;;  %v3324_v29 = vor.u32 %v3649_v36, %v3321_v27  ;;  %v3660_v36 = vld [vmem:[#allocation11 + $0x38] sm:$0xff] }
 0x10a   :  { %2061 = vmatpush.bf16.msrb.mxu1 %v3180_v34  ;;  %v1437_v19 = vpop.f32.mrf.mxu3  ;;  %v3252_v39 = vor.u32 %v3631_v32, %v3249_v35  ;;  %v3313_v32 = vld [vmem:[#allocation9 + $0x1d8] sm:$0xf0]  ;;  %v3659_v27 = vld [vmem:[#allocation11 + $0x30] sm:$0xff] }
 0x10b   :  { %2014 = vmatmul.bf16.vlgmr.msra.gmra.mxu1 %v1600_v12  ;;  %v3271_v19 = vld [vmem:[#allocation9 + $0x180] sm:$0xf] }
 0x10c   :  { %2072 = vmatpush.bf16.msrb.mxu2 %v3260_v22  ;;  %v3272_v21 = vor.u32 %v3638_v20, %v3271_v19 }
 0x10d   :  { %2049 = vmatpush.bf16.msrb.mxu0 %v3108_v38 }
 0x10e   :  { %2062 = vmatpush.bf16.msrb.mxu1 %v3172_v50 }
 0x110   :  { %2073 = vmatpush.bf16.msrb.mxu2 %v3252_v39 }
 0x111   :  { %2050 = vmatpush.bf16.msrb.mxu0 %v3100_v59  ;;  %v3295_v59 = vld [vmem:[#allocation9 + $0x1b0] sm:$0xf] }
 0x112   :  { %2063 = vmatpush.bf16.msrb.mxu1 %v3164_v62  ;;  %v3623_v62 = vld [vmem:[#allocation9 + $0x114] sm:$0xf]  ;;  %v3296_v0 = vor.u32 %v3644_v26, %v3295_v59 }
 0x113   :  { %v3220_v3 = vor.u32 %v3623_v62, %v3217_v63 }
 0x114   :  { %2036 = vmatpush.bf16.msra.mxu3 %v3296_v0 }
 0x115   :  { %2051 = vmatpush.bf16.msrb.mxu0 %v3092_v8  ;;  %v3209_v8 = vld [vmem:[#allocation9 + $0x108] sm:$0xf0] }
 0x116   :  { %2064 = vmatpush.bf16.msrb.mxu1 %v3156_v15  ;;  %v3640_v15 = vld [vmem:[#allocation9 + $0x194] sm:$0xf0]  ;;  %v3212_v17 = vor.u32 %v3621_v7, %v3209_v8 }
 0x117   :  { %v3280_v9 = vor.u32 %v3640_v15, %v3279_v14  ;;  %v1667_v15 = vld [vmem:[%s3994_s4] sm:$0x3] }
 0x118   :  { %2037 = vmatpush.bf16.msra.mxu3 %v3288_v13 }
 0x119   :  { %2052 = vmatpush.bf16.msrb.mxu0 %v3084_v23  ;;  %v1448_v37 = vpop.f32.mrf.mxu0  ;;  %v3651_v23 = vld [vmem:[#allocation9 + $0x1f4] sm:$0xf] }
 0x11a   :  { %2065 = vmatpush.bf16.msrb.mxu1 %v3148_v24  ;;  %v1461_v34 = vpop.f32.mrf.mxu1  ;;  %v1449_v4 = vadd.f32 %v1448_v37, %v317_v61  ;;  %v3332_v24 = vor.u32 %v3651_v23, %v3329_v16  ;;  %v3316_v37 = vor.u32 %v3647_v31, %v3313_v32  ;;  %v3667_v31 = vld [vmem:[#allocation11 + $0x70] sm:$0xff] }
 0x11b   :  { %v3655_v32 = vld [vmem:[#allocation11 + $0x10] sm:$0xff] }
 0x11c   :  { %2053 = vmatmul.bf16.vlgmr.msrb.gmra.mxu0 %v3971_v11  ;;  %v3244_v11 = vor.u32 %v3629_v44, %v3241_v45  ;;  %v1462_v18 = vadd.f32 %v1461_v34, %v1449_v4  ;;  %2038 = vmatpush.bf16.msra.mxu3 %v3280_v9  ;;  %v3305_v44 = vld [vmem:[#allocation9 + $0x1c8] sm:$0xf0] }
 0x11d   :  { %2066 = vmatmul.bf16.vlgmr.msrb.gmra.mxu1 %v1600_v12  ;;  %2233 = vmatpush.bf16.msra.mxu0 %v3660_v36 }
 0x11e   :  { %2074 = vmatpush.bf16.msrb.mxu2 %v3244_v11  ;;  %v3308_v11 = vor.u32 %v3645_v43, %v3305_v44  ;;  %v3664_v43 = vld [vmem:[#allocation11 + $0x58] sm:$0xff]  ;;  %v3663_v44 = vld [vmem:[#allocation11 + $0x50] sm:$0xff] }
 0x120   :  { %2039 = vmatpush.bf16.msra.mxu3 %v3272_v21  ;;  %v1670_v21 = vperm.slane %v1667_v15, 1 }
 0x121   :  { %v1474_v38 = vpop.f32.mrf.mxu2  ;;  %v1450_v50 = vpop.f32.mrf.mxu0  ;;  %2234 = vmatpush.bf16.msra.mxu0 %v3659_v27 }
 0x122   :  { %v1487_v51 = vpop.f32.mrf.mxu3  ;;  %v1463_v57 = vpop.f32.mrf.mxu1  ;;  %2075 = vmatpush.bf16.msrb.mxu2 %v3236_v52  ;;  %v1475_v6 = vadd.f32 %v1474_v38, %v1462_v18  ;;  %v3641_v38 = vld [vmem:[#allocation9 + $0x1a4] sm:$0xf]  ;;  %v3639_v52 = vld [vmem:[#allocation9 + $0x194] sm:$0xf] }
 0x123   :  { %v3292_v50 = vor.u32 %v3641_v38, %v3289_v48  ;;  %v3284_v54 = vor.u32 %v3639_v52, %v3281_v53  ;;  %v3273_v57 = vld [vmem:[#allocation9 + $0x188] sm:$0xf0] }
 0x124   :  { %v1488_v33 = vadd.f32 %v1487_v51, %v1475_v6  ;;  %2084 = vmatpush.bf16.msrb.mxu3 %v3332_v24  ;;  %v3276_v58 = vor.u32 %v3637_v56, %v3273_v57 }
 0x126   :  { %2076 = vmatpush.bf16.msrb.mxu2 %v3228_v60 }
 0x128   :  { %2085 = vmatpush.bf16.msrb.mxu3 %v3324_v29  ;;  %v3656_v29 = vld [vmem:[#allocation11 + $0x18] sm:$0xff] }
 0x129   :  { %v1476_v5 = vpop.f32.mrf.mxu2 }
 0x12a   :  { %v1489_v12 = vpop.f32.mrf.mxu3  ;;  %2077 = vmatpush.bf16.msrb.mxu2 %v3220_v3 }
 0x12c   :  { %2086 = vmatpush.bf16.msrb.mxu3 %v3316_v37  ;;  %v3654_v37 = vld [vmem:[#allocation11 + $0x8] sm:$0xff] }
 0x12e   :  { %2078 = vmatpush.bf16.msrb.mxu2 %v3212_v17  ;;  %v1669_v17 = vperm.slane %v1667_v15, 0 }
 0x130   :  { %2087 = vmatpush.bf16.msrb.mxu3 %v3308_v11  ;;  %v3662_v11 = vld [vmem:[#allocation11 + $0x48] sm:$0xff] }
 0x134   :  { %2088 = vmatpush.bf16.msrb.mxu3 %v3300_v47 }
 0x138   :  { %2089 = vmatpush.bf16.msrb.mxu3 %v3292_v50 }
 0x139   :  { %v1500_v25 = vpop.f32.mrf.mxu0 }
 0x13a   :  { %v1501_v28 = vadd.f32 %v1500_v25, %v1488_v33  ;;  %v1513_v22 = vpop.f32.mrf.mxu1 }
 0x13c   :  { %v1514_v30 = vadd.f32 %v1513_v22, %v1501_v28  ;;  %2090 = vmatpush.bf16.msrb.mxu3 %v3284_v54  ;;  %v3658_v28 = vld [vmem:[#allocation11 + $0x28] sm:$0xff]  ;;  %v3657_v22 = vld [vmem:[#allocation11 + $0x20] sm:$0xff] }
 0x13d   :  { %2235 = vmatpush.bf16.msra.mxu0 %v3658_v28 }
 0x13e   :  { %v1597_v35 = vmax.f32 %v1514_v30, 0.0  ;;  %v3668_v30 = vld [vmem:[#allocation11 + $0x78] sm:$0xff] }
 0x13f   :  { %2246 = vmatpush.bf16.msra.mxu1 %v3668_v30 }
 0x140   :  { %v1601_v39 = vpack.c.bf16 %v1597_v35, %v1597_v35  ;;  %2091 = vmatpush.bf16.msrb.mxu3 %v3276_v58  ;;  %v2261_v58 = vld [vmem:[#allocation2] sm:$0x1] }
 0x141   :  { %v1526_v34 = vpop.f32.mrf.mxu2  ;;  %v1502_v42 = vpop.f32.mrf.mxu0  ;;  %2236 = vmatpush.bf16.msra.mxu0 %v3657_v22 }
 0x142   :  { %v1539_v41 = vpop.f32.mrf.mxu3  ;;  %2027 = vmatmul.bf16.vlgmr.msra.gmra.mxu2 %v1601_v39  ;;  %v1515_v45 = vpop.f32.mrf.mxu1  ;;  %v1527_v59 = vadd.f32 %v1526_v34, %v318_v10  ;;  %v3653_v34 = vld [vmem:[#allocation11] sm:$0xff] }
 0x143   :  { %2247 = vmatpush.bf16.msra.mxu1 %v3667_v31 }
 0x144   :  { %v1540_v26 = vadd.f32 %v1539_v41, %v1527_v59  ;;  %v3665_v41 = vld [vmem:[#allocation11 + $0x60] sm:$0xff]  ;;  %v3847_v59 = vmov 0  }
 0x145   :  { %2237 = vmatpush.bf16.msra.mxu0 %v3656_v29  ;;  %3682 = vset.pattern.permute.xlu0 %v3847_v59 }
 0x146   :  { %2264 = vperm.xlu0 %3682, %v2261_v58  }
 0x149   :  { %v1528_v49 = vpop.f32.mrf.mxu2  ;;  %2238 = vmatpush.bf16.msra.mxu0 %v3655_v32 }
 0x14a   :  { %v1541_v51 = vpop.f32.mrf.mxu3 }
 0x14d   :  { %2239 = vmatpush.bf16.msra.mxu0 %v3654_v37 }
 0x151   :  { %2240 = vmatpush.bf16.msra.mxu0 %v3653_v34 }
 0x152   :  { %2079 = vmatmul.bf16.vlgmr.msrb.gmra.mxu2 %v1601_v39  ;;  %v3666_v39 = vld [vmem:[#allocation11 + $0x68] sm:$0xff] }
 0x153   :  { %2248 = vmatpush.bf16.msra.mxu1 %v3666_v39 }
 0x157   :  { %2249 = vmatpush.bf16.msra.mxu1 %v3665_v41 }
 0x159   :  { %v1552_v60 = vpop.f32.mrf.mxu0 }
 0x15a   :  { %v1565_v61 = vpop.f32.mrf.mxu1  ;;  %v1553_v62 = vadd.f32 %v1552_v60, %v1540_v26 }
 0x15b   :  { %2250 = vmatpush.bf16.msra.mxu1 %v3664_v43 }
 0x15c   :  { %v1566_v63 = vadd.f32 %v1565_v61, %v1553_v62  ;;  %v3683_v61 = vld [vmem:[%s3996_s6] ss:$0 sm:$0xff] }
 0x15f   :  { %2251 = vmatpush.bf16.msra.mxu1 %v3663_v44 }
 0x161   :  { %v1578_v0 = vpop.f32.mrf.mxu2  ;;  %v1554_v3 = vpop.f32.mrf.mxu0 }
 0x162   :  { %v1579_v1 = vadd.f32 %v1578_v0, %v1566_v63  ;;  %v1591_v2 = vpop.f32.mrf.mxu3  ;;  %v1567_v4 = vpop.f32.mrf.mxu1 }
 0x163   :  { %2252 = vmatpush.bf16.msra.mxu1 %v3662_v11 }
 0x164   :  { %v1592_v5 = vadd.f32 %v1591_v2, %v1579_v1  ;;  %v2260_v2 = vld [vmem:[%s3997_s7] sm:$0x1] }
 0x166   :  { %v1598_v7 = vmax.f32 %v1592_v5, 0.0 }
 0x167   :  { %2253 = vmatpush.bf16.msra.mxu1 %v3661_v40 }
 0x168   :  { %v1602_v8 = vpack.c.bf16 %v1598_v7, %v1598_v7 }
 0x169   :  { %v1580_v12 = vpop.f32.mrf.mxu2 }
 0x16a   :  { %v1593_v55 = vpop.f32.mrf.mxu3  ;;  %2040 = vmatmul.bf16.vlgmr.msra.gmra.mxu3 %v1602_v8 }
 0x179   :  { %v2002_v13 = vpop.f32.mrf.mxu0 }
 0x17a   :  { %2092 = vmatmul.bf16.vlgmr.msrb.gmra.mxu3 %v1602_v8  ;;  %v2003_v18 = vadd.f32 %v2002_v13, %v1669_v17 }
 0x181   :  { %v2004_v14 = vpop.f32.mrf.mxu0 }
 0x188   :  { %v2015_v9 = vpop.f32.mrf.mxu1 }
 0x189   :  { %v2016_v6 = vadd.f32 %v2015_v9, %v2003_v18 }
 0x190   :  { %v2017_v20 = vpop.f32.mrf.mxu1 }
 0x199   :  { %v2054_v19 = vpop.f32.mrf.mxu0 }
 0x19a   :  { %v2055_v23 = vadd.f32 %v2054_v19, %v1670_v21  ;;  %v2067_v33 = vpop.f32.mrf.mxu1 }
 0x19c   :  { %v2068_v24 = vadd.f32 %v2067_v33, %v2055_v23 }
 0x1a1   :  { %v2056_v16 = vpop.f32.mrf.mxu0 }
 0x1a2   :  { %v2069_v25 = vpop.f32.mrf.mxu1 }
 0x1b8   :  { %v2265_v4 = vpop.permute.xlu0 %2264 }
 0x1b9   :  { %v2267_v5 = vperm.slane %v2265_v4, 0 }
 0x1c5   :  { %v2028_v35 = vpop.f32.mrf.mxu2 }
 0x1c6   :  { %v2029_v47 = vadd.f32 %v2028_v35, %v2016_v6 }
 0x1cd   :  { %v2030_v42 = vpop.f32.mrf.mxu2 }
 0x1d5   :  { %v2080_v45 = vpop.f32.mrf.mxu2 }
 0x1d6   :  { %v2081_v52 = vadd.f32 %v2080_v45, %v2068_v24 }
 0x1dd   :  { %v2082_v46 = vpop.f32.mrf.mxu2 }
 0x1ed   :  { %v2041_v38 = vpop.f32.mrf.mxu3 }
 0x1ee   :  { %v2042_v48 = vadd.f32 %v2041_v38, %v2029_v47 }
 0x1f0   :  { %v2097_v49 = vmax.f32 %v2042_v48, 0.0 }
 0x1f2   :  { %v2099_v50 = vpack.c.bf16 %v2097_v49, %v2097_v49 }
 0x1f4   :  { %2241 = vmatmul.bf16.vlgmr.msra.gmra.mxu0 %v2099_v50 }
 0x1f5   :  { %v2043_v51 = vpop.f32.mrf.mxu3 }
 0x1fd   :  { %v2093_v53 = vpop.f32.mrf.mxu3 }
 0x1fe   :  { %v2094_v54 = vadd.f32 %v2093_v53, %v2081_v52 }
 0x200   :  { %v2098_v56 = vmax.f32 %v2094_v54, 0.0 }
 0x202   :  { %v2100_v57 = vpack.c.bf16 %v2098_v56, %v2098_v56 }
 0x204   :  { %2254 = vmatmul.bf16.vlgmr.msra.gmra.mxu1 %v2100_v57 }
 0x205   :  { %v2095_v10 = vpop.f32.mrf.mxu3 }
 0x271   :  { %v2242_v26 = vpop.f32.mrf.mxu0 }
 0x272   :  { %v2243_v62 = vadd.f32 %v3683_v61, %v2242_v26 }
 0x279   :  { %v2244_v60 = vpop.f32.mrf.mxu0 }
 0x281   :  { %v2255_v63 = vpop.f32.mrf.mxu1 }
 0x282   :  { %v2256_v0 = vadd.f32 %v2255_v63, %v2243_v62 }
 0x284   :  { %v2259_v1 = vmax.f32 %v2256_v0, 0.0 }
 0x286   :  { %2283 = vmatpush.xpose.msra.mxu2 %v2259_v1 }
 0x289   :  { %v2257_v3 = vpop.f32.mrf.mxu1  ;;  %2284 = vmatmul.f32.vlgmr.msra.gmra.mxu2 %v2260_v2 }
 0x30c   :  { %v2285_v7 = vpop.f32.mrf.mxu2 }
 0x30d   :  { %v2286_v8 = vadd.f32 %v2285_v7, %v2267_v5 }
 0x30f   :  { %2289 = vst.msk [vmem:[#allocation12] sm:$0x1] %vm2288_vm0, %v2286_v8 }
 0x310   :  { %2300 = dma.vmem_to_hbm [thread:$0]  %s2296_s8, 16, %s2298_s23, [#allocation5]  }
 0x311   :  { %3834 = dma.done.wait [#allocation5], 16  }
 0x312   :  { %3835 = vsyncadd [#allocation5], 4294967280 }
 0x313   :  { %2305 = vsyncpa [#allocation4], 1 }
 0x314   :  { %2306 = vsyncpa [#allocation7], 1 }
 0x315   :  { %2307 = vsyncpa [#allocation10], 1 }
 0x316   :  { %2308 = vsyncpa [#allocation5], 1 }

</bundles_post_ra>
